<compile_context>
chip_gen: v5e
topology: v5e:2x2
jax: 0.10.0
libtpu: 0.0.40
codegen_flags: <defaults>
</compile_context>

<pallas_src>
import functools

import jax
import jax.numpy as jnp
import numpy as np
from jax import lax
from jax.experimental import pallas as pl
from jax.experimental.pallas import tpu as pltpu


def _self_attention1_kernel(consts_ref, xt_ref, xp_ref, xp2_ref, xa_ref,
                            wk_ref, bk_ref, wv_ref, bvm_ref, out_ref):
    # consts_ref (SMEM, f32[2]): a = sum(wq)*scale*M_st[0,td],
    #                            b = sum(bq)*scale*M_st[0,td]
    a = consts_ref[0]
    b = consts_ref[1]

    xt = xt_ref[...]                                      # (Bb, T, 1)
    s = xt * a + b                                        # pre-scaled row weights
    xp = xp_ref[...]                                      # (Bb, T, F)

    # ---- key path (scores matrix + row-sum eliminated algebraically) ----
    # reduced = (s_row @ xp) @ Wk^T + sum(s_row) * bk            -> (Bb, F)
    u = jnp.sum(s * xp, axis=1)                           # (Bb, F)
    s_sum = jnp.sum(s, axis=1)                            # (Bb, 1)
    reduced = (lax.dot_general(u, wk_ref[...],            # contract dim1 x dim1 == u @ Wk^T
                               dimension_numbers=(((1,), (1,)), ((), ())),
                               preferred_element_type=jnp.float32)
               + s_sum * bk_ref[...])                     # (Bb, F)

    # ---- softmax over the feature axis (lanes) ----
    mx = jnp.max(reduced, axis=-1, keepdims=True)
    ex = jnp.exp(reduced - mx)
    attn = ex / jnp.sum(ex, axis=-1, keepdims=True)       # (Bb, F)

    # ---- value path (reassociated: (attn @ xp2) @ Wv^T + (bv + M_st)) ----
    # VPU multiply + axis-1 reduce instead of Bb batched M=1 MXU matmuls.
    av = jnp.sum(attn[:, :, None] * xp2_ref[...], axis=1)  # (Bb, F), f32 accum
    final = (lax.dot_general(av, wv_ref[...],              # == av @ Wv^T
                             dimension_numbers=(((1,), (1,)), ((), ())),
                             preferred_element_type=jnp.float32)
             + bvm_ref[...])                               # (Bb, F)

    # ---- broadcast over the auxiliary-sequence tile and re-weight ----
    out_ref[...] = (xa_ref[...] * final[:, None, :]).astype(out_ref.dtype)


def _num_tensorcores():
    """Best-effort TensorCores-per-chip: 2 on v7x, else 1 (v5e / v6e)."""
    try:
        dev = jax.devices()[0]
    except Exception:
        return 1
    kind = str(getattr(dev, "device_kind", "")).lower()
    return 2 if "v7" in kind else 1


def _pick_block_b(B, num_tc, cap=32):
    """Largest divisor of B <= cap.  Single-TC chips get one grid step
    (bblk = B) when it fits; multi-TC chips keep >= num_tc steps so every
    TensorCore gets work.  cap=32 keeps per-step VMEM (double-buffered) well
    under v5e's 16 MiB scoped limit (and v7x's 64 MiB physical VMEM)."""
    if B <= 1:
        return 1
    target = min(cap, B if num_tc <= 1 else max(1, B // num_tc))
    for d in range(target, 0, -1):
        if B % d == 0:        # prime B degrades to bblk=1 (correct, just slower)
            return d
    return 1


@functools.partial(jax.jit, static_argnames=("target_dim",))
def self_attention1_forward(x_target, x_auxiliary, x_auxiliary_pooled,
                            x_auxiliary_pooled2,
                            wq, bq, wk, bk, wv, bv, m_st, *, target_dim):
    B, T, _ = x_target.shape
    _, T_aux, F = x_auxiliary.shape
    scale = 1.0 / np.sqrt(F)             # feature_dim == F (module requirement)

    # ---- tiny parameter-side folds (one small XLA fusion, no big intermediates) ----
    c = scale * m_st[0, target_dim]
    consts = jnp.stack([jnp.sum(wq) * c, jnp.sum(bq) * c]).astype(jnp.float32)
    bk2 = bk.reshape(1, F)
    bvm = (bv + m_st[0]).reshape(1, F)    # softmax rows sum to 1 -> fold bv + M_st

    # ---- generation-aware grid ----
    num_tc = _num_tensorcores()
    bblk = _pick_block_b(B, num_tc)
    n_b = B // bblk
    # If a 2-TC chip would only get one batch step, split the aux-seq axis instead.
    if num_tc > 1 and n_b < num_tc and T_aux % 16 == 0:
        t_blk = T_aux // 2
    else:
        t_blk = T_aux
    n_t = T_aux // t_blk
    grid = (n_b, n_t)

    return pl.pallas_call(
        _self_attention1_kernel,
        out_shape=jax.ShapeDtypeStruct((B, T_aux, F), x_auxiliary.dtype),
        grid=grid,
        in_specs=[
            pl.BlockSpec(memory_space=pltpu.MemorySpace.SMEM),          # consts [a, b]
            pl.BlockSpec((bblk, T, 1),     lambda b, t: (b, 0, 0)),     # x_target
            pl.BlockSpec((bblk, T, F),     lambda b, t: (b, 0, 0)),     # x_auxiliary_pooled
            pl.BlockSpec((bblk, F, F),     lambda b, t: (b, 0, 0)),     # x_auxiliary_pooled2
            pl.BlockSpec((bblk, t_blk, F), lambda b, t: (b, t, 0)),     # x_auxiliary
            pl.BlockSpec((F, F), lambda b, t: (0, 0)),                  # Wk (untransposed)
            pl.BlockSpec((1, F), lambda b, t: (0, 0)),                  # bk
            pl.BlockSpec((F, F), lambda b, t: (0, 0)),                  # Wv (untransposed)
            pl.BlockSpec((1, F), lambda b, t: (0, 0)),                  # bv + M_st
        ],
        out_specs=pl.BlockSpec((bblk, t_blk, F), lambda b, t: (b, t, 0)),
        compiler_params=pltpu.CompilerParams(
            dimension_semantics=("parallel", "parallel")),
    )(consts, x_target, x_auxiliary_pooled, x_auxiliary_pooled2, x_auxiliary,
      wk, bk2, wv, bvm)


def self_attention1_reference(x_target, x_auxiliary, x_auxiliary_pooled,
                              x_auxiliary_pooled2,
                              wq, bq, wk, bk, wv, bv, m_st, target_dim):
    """Pure-JAX mirror of the PyTorch forward (for verification)."""
    F = wk.shape[0]
    scale = 1.0 / np.sqrt(F)
    q1 = x_target @ wq.T + bq
    k1 = x_auxiliary_pooled @ wk.T + bk
    v1 = x_auxiliary_pooled2 @ wv.T + bv
    scores = jnp.matmul(jnp.swapaxes(q1, -2, -1), k1) * scale
    m_row = m_st[:, target_dim][None, :, None]           # scalar, broadcast
    scores = scores * m_row
    reduced = jnp.sum(scores, axis=1, keepdims=True)
    attn = jax.nn.softmax(reduced, axis=-1)
    weighted = jnp.matmul(attn, v1)
    final = weighted + m_st[None, :, :]
    return x_auxiliary * final


if __name__ == "__main__":
    B, T, T_aux = 8, 8, 16
    F = 128                 # feature_dim == num_auxiliary
    target_dim = 5

    key = jax.random.PRNGKey(0)
    ks = jax.random.split(key, 11)
    x_target            = jax.random.normal(ks[0], (B, T, 1), jnp.float32)
    x_auxiliary         = jax.random.normal(ks[1], (B, T_aux, F), jnp.float32)
    x_auxiliary_pooled  = jax.random.normal(ks[2], (B, T, F), jnp.float32)
    x_auxiliary_pooled2 = jax.random.normal(ks[3], (B, F, F), jnp.float32)

    # Deterministic synthetic parameters (shapes per nn.Linear / nn.Parameter).
    wq   = jax.random.normal(ks[4], (F, 1), jnp.float32) * 0.1   # query: Linear(1, F)
    bq   = jax.random.normal(ks[5], (F,),   jnp.float32) * 0.1
    wk   = jax.random.normal(ks[6], (F, F), jnp.float32) * 0.05  # key:   Linear(F, F)
    bk   = jax.random.normal(ks[7], (F,),   jnp.float32) * 0.1
    wv   = jax.random.normal(ks[8], (F, F), jnp.float32) * 0.05  # value: Linear(F, F)
    bv   = jax.random.normal(ks[9], (F,),   jnp.float32) * 0.1
    m_st = jax.random.normal(ks[10], (1, F), jnp.float32)        # M_st (1, num_auxiliary)

    out = self_attention1_forward(x_target, x_auxiliary, x_auxiliary_pooled,
                                  x_auxiliary_pooled2,
                                  wq, bq, wk, bk, wv, bv, m_st,
                                  target_dim=target_dim)
    jax.block_until_ready(out)

    ref = self_attention1_reference(x_target, x_auxiliary, x_auxiliary_pooled,
                                    x_auxiliary_pooled2,
                                    wq, bq, wk, bk, wv, bv, m_st, target_dim)
    np.testing.assert_allclose(np.asarray(out), np.asarray(ref),
                               atol=2e-4, rtol=2e-4)
    print("KERNEL_OK")
</pallas_src>

<mosaic_0001>
module attributes {stable_mosaic.version = 11 : i64} {
  func.func @_self_attention1_kernel(%arg0: i32, %arg1: i32, %arg2: memref<2xf32, #tpu.memory_space<smem>>, %arg3: memref<8x8x1xf32, #tpu.memory_space<vmem>>, %arg4: memref<8x8x128xf32, #tpu.memory_space<vmem>>, %arg5: memref<8x128x128xf32, #tpu.memory_space<vmem>>, %arg6: memref<8x16x128xf32, #tpu.memory_space<vmem>>, %arg7: memref<128x128xf32, #tpu.memory_space<vmem>>, %arg8: memref<1x128xf32, #tpu.memory_space<vmem>>, %arg9: memref<128x128xf32, #tpu.memory_space<vmem>>, %arg10: memref<1x128xf32, #tpu.memory_space<vmem>>, %arg11: memref<8x16x128xf32, #tpu.memory_space<vmem>>) attributes {dimension_semantics = [#tpu.dimension_semantics<parallel>, #tpu.dimension_semantics<parallel>], iteration_bounds = array<i64: 1, 1>, scalar_prefetch = 0 : i64, scratch_operands = 0 : i64, tpu.core_type = #tpu.core_type<tc>, window_params = [{transform_indices = @transform_0, window_bounds = array<i64: 2>}, {transform_indices = @transform_1, window_bounds = array<i64: 8, 8, 1>}, {transform_indices = @transform_2, window_bounds = array<i64: 8, 8, 128>}, {transform_indices = @transform_3, window_bounds = array<i64: 8, 128, 128>}, {transform_indices = @transform_4, window_bounds = array<i64: 8, 16, 128>}, {pipeline_mode = #tpu.pipeline_mode<synchronous>, transform_indices = @transform_5, window_bounds = array<i64: 128, 128>}, {pipeline_mode = #tpu.pipeline_mode<synchronous>, transform_indices = @transform_6, window_bounds = array<i64: 1, 128>}, {pipeline_mode = #tpu.pipeline_mode<synchronous>, transform_indices = @transform_7, window_bounds = array<i64: 128, 128>}, {pipeline_mode = #tpu.pipeline_mode<synchronous>, transform_indices = @transform_8, window_bounds = array<i64: 1, 128>}, {transform_indices = @transform_9, window_bounds = array<i64: 8, 16, 128>}]} {
    %c0 = arith.constant 0 : index
    %0 = memref.load %arg2[%c0] : memref<2xf32, #tpu.memory_space<smem>>
    %c1 = arith.constant 1 : index
    %1 = memref.load %arg2[%c1] : memref<2xf32, #tpu.memory_space<smem>>
    %c0_0 = arith.constant 0 : index
    %c0_1 = arith.constant 0 : index
    %c0_2 = arith.constant 0 : index
    %2 = vector.load %arg3[%c0_0, %c0_1, %c0_2] : memref<8x8x1xf32, #tpu.memory_space<vmem>>, vector<8x8x1xf32>
    %3 = vector.broadcast %0 : f32 to vector<8x8x1xf32>
    %4 = arith.mulf %2, %3 : vector<8x8x1xf32>
    %5 = vector.broadcast %1 : f32 to vector<8x8x1xf32>
    %6 = arith.addf %4, %5 : vector<8x8x1xf32>
    %c0_3 = arith.constant 0 : index
    %c0_4 = arith.constant 0 : index
    %c0_5 = arith.constant 0 : index
    %7 = vector.load %arg4[%c0_3, %c0_4, %c0_5] : memref<8x8x128xf32, #tpu.memory_space<vmem>>, vector<8x8x128xf32>
    %8 = vector.broadcast %6 : vector<8x8x1xf32> to vector<8x8x128xf32>
    %9 = arith.mulf %8, %7 : vector<8x8x128xf32>
    %cst = arith.constant dense<0.000000e+00> : vector<8x128xf32>
    %10 = vector.multi_reduction <add>, %9, %cst [1] : vector<8x8x128xf32> to vector<8x128xf32>
    %cst_6 = arith.constant dense<0.000000e+00> : vector<8x1xf32>
    %11 = vector.multi_reduction <add>, %6, %cst_6 [1] : vector<8x8x1xf32> to vector<8x1xf32>
    %c0_7 = arith.constant 0 : index
    %c0_8 = arith.constant 0 : index
    %12 = vector.load %arg7[%c0_7, %c0_8] : memref<128x128xf32, #tpu.memory_space<vmem>>, vector<128x128xf32>
    %cst_9 = arith.constant dense<0.000000e+00> : vector<8x128xf32>
    %13 = tpu.matmul %10, %12, %cst_9 {dimension_numbers = #tpu.dot_dimension_numbers<[1], [1], [0], [0], [0, 0, 1, 0], [], []>} : vector<8x128xf32>, vector<128x128xf32>, vector<8x128xf32> -> vector<8x128xf32>
    %c0_10 = arith.constant 0 : index
    %c0_11 = arith.constant 0 : index
    %14 = vector.load %arg8[%c0_10, %c0_11] : memref<1x128xf32, #tpu.memory_space<vmem>>, vector<1x128xf32>
    %15 = vector.broadcast %11 : vector<8x1xf32> to vector<8x128xf32>
    %16 = vector.broadcast %14 : vector<1x128xf32> to vector<8x128xf32>
    %17 = arith.mulf %15, %16 : vector<8x128xf32>
    %18 = arith.addf %13, %17 : vector<8x128xf32>
    %cst_12 = arith.constant dense<0xFF800000> : vector<8xf32>
    %19 = vector.multi_reduction <maximumf>, %18, %cst_12 [1] : vector<8x128xf32> to vector<8xf32>
    %20 = vector.shape_cast %19 : vector<8xf32> to vector<8x1xf32>
    %21 = vector.broadcast %20 : vector<8x1xf32> to vector<8x128xf32>
    %22 = arith.subf %18, %21 : vector<8x128xf32>
    %23 = math.exp %22 : vector<8x128xf32>
    %cst_13 = arith.constant dense<0.000000e+00> : vector<8xf32>
    %24 = vector.multi_reduction <add>, %23, %cst_13 [1] : vector<8x128xf32> to vector<8xf32>
    %25 = vector.shape_cast %24 : vector<8xf32> to vector<8x1xf32>
    %26 = vector.broadcast %25 : vector<8x1xf32> to vector<8x128xf32>
    %27 = arith.divf %23, %26 : vector<8x128xf32>
    %28 = vector.shape_cast %27 : vector<8x128xf32> to vector<8x128x1xf32>
    %c0_14 = arith.constant 0 : index
    %c0_15 = arith.constant 0 : index
    %c0_16 = arith.constant 0 : index
    %29 = vector.load %arg5[%c0_14, %c0_15, %c0_16] : memref<8x128x128xf32, #tpu.memory_space<vmem>>, vector<8x128x128xf32>
    %30 = vector.broadcast %28 : vector<8x128x1xf32> to vector<8x128x128xf32>
    %31 = arith.mulf %30, %29 : vector<8x128x128xf32>
    %cst_17 = arith.constant dense<0.000000e+00> : vector<8x128xf32>
    %32 = vector.multi_reduction <add>, %31, %cst_17 [1] : vector<8x128x128xf32> to vector<8x128xf32>
    %c0_18 = arith.constant 0 : index
    %c0_19 = arith.constant 0 : index
    %33 = vector.load %arg9[%c0_18, %c0_19] : memref<128x128xf32, #tpu.memory_space<vmem>>, vector<128x128xf32>
    %cst_20 = arith.constant dense<0.000000e+00> : vector<8x128xf32>
    %34 = tpu.matmul %32, %33, %cst_20 {dimension_numbers = #tpu.dot_dimension_numbers<[1], [1], [0], [0], [0, 0, 1, 0], [], []>} : vector<8x128xf32>, vector<128x128xf32>, vector<8x128xf32> -> vector<8x128xf32>
    %c0_21 = arith.constant 0 : index
    %c0_22 = arith.constant 0 : index
    %35 = vector.load %arg10[%c0_21, %c0_22] : memref<1x128xf32, #tpu.memory_space<vmem>>, vector<1x128xf32>
    %36 = vector.broadcast %35 : vector<1x128xf32> to vector<8x128xf32>
    %37 = arith.addf %34, %36 : vector<8x128xf32>
    %c0_23 = arith.constant 0 : index
    %c0_24 = arith.constant 0 : index
    %c0_25 = arith.constant 0 : index
    %38 = vector.load %arg6[%c0_23, %c0_24, %c0_25] : memref<8x16x128xf32, #tpu.memory_space<vmem>>, vector<8x16x128xf32>
    %39 = vector.shape_cast %37 : vector<8x128xf32> to vector<8x1x128xf32>
    %40 = vector.broadcast %39 : vector<8x1x128xf32> to vector<8x16x128xf32>
    %41 = arith.mulf %38, %40 : vector<8x16x128xf32>
    %c0_26 = arith.constant 0 : index
    %c0_27 = arith.constant 0 : index
    %c0_28 = arith.constant 0 : index
    %42 = vector.load %arg11[%c0_26, %c0_27, %c0_28] : memref<8x16x128xf32, #tpu.memory_space<vmem>>, vector<8x16x128xf32>
    tpu.vector_store %arg11[%c0_26, %c0_27, %c0_28], %41 {strides = array<i32>} : memref<8x16x128xf32, #tpu.memory_space<vmem>>, vector<8x16x128xf32>,
    return
  }
  func.func @transform_0(%arg0: i32, %arg1: i32) -> i32 {
    %c0_i32 = arith.constant 0 : i32
    %c0_i32_0 = arith.constant 0 : i32
    return %c0_i32 : i32
  }
  func.func @transform_1(%arg0: i32, %arg1: i32) -> (i32, i32, i32) {
    %c0_i32 = arith.constant 0 : i32
    %c0_i32_0 = arith.constant 0 : i32
    %c0_i32_1 = arith.constant 0 : i32
    return %arg0, %c0_i32, %c0_i32_0 : i32, i32, i32
  }
  func.func @transform_2(%arg0: i32, %arg1: i32) -> (i32, i32, i32) {
    %c0_i32 = arith.constant 0 : i32
    %c0_i32_0 = arith.constant 0 : i32
    %c0_i32_1 = arith.constant 0 : i32
    return %arg0, %c0_i32, %c0_i32_0 : i32, i32, i32
  }
  func.func @transform_3(%arg0: i32, %arg1: i32) -> (i32, i32, i32) {
    %c0_i32 = arith.constant 0 : i32
    %c0_i32_0 = arith.constant 0 : i32
    %c0_i32_1 = arith.constant 0 : i32
    return %arg0, %c0_i32, %c0_i32_0 : i32, i32, i32
  }
  func.func @transform_4(%arg0: i32, %arg1: i32) -> (i32, i32, i32) {
    %c0_i32 = arith.constant 0 : i32
    %c0_i32_0 = arith.constant 0 : i32
    return %arg0, %arg1, %c0_i32 : i32, i32, i32
  }
  func.func @transform_5(%arg0: i32, %arg1: i32) -> (i32, i32) {
    %c0_i32 = arith.constant 0 : i32
    %c0_i32_0 = arith.constant 0 : i32
    %c0_i32_1 = arith.constant 0 : i32
    return %c0_i32, %c0_i32_0 : i32, i32
  }
  func.func @transform_6(%arg0: i32, %arg1: i32) -> (i32, i32) {
    %c0_i32 = arith.constant 0 : i32
    %c0_i32_0 = arith.constant 0 : i32
    %c0_i32_1 = arith.constant 0 : i32
    return %c0_i32, %c0_i32_0 : i32, i32
  }
  func.func @transform_7(%arg0: i32, %arg1: i32) -> (i32, i32) {
    %c0_i32 = arith.constant 0 : i32
    %c0_i32_0 = arith.constant 0 : i32
    %c0_i32_1 = arith.constant 0 : i32
    return %c0_i32, %c0_i32_0 : i32, i32
  }
  func.func @transform_8(%arg0: i32, %arg1: i32) -> (i32, i32) {
    %c0_i32 = arith.constant 0 : i32
    %c0_i32_0 = arith.constant 0 : i32
    %c0_i32_1 = arith.constant 0 : i32
    return %c0_i32, %c0_i32_0 : i32, i32
  }
  func.func @transform_9(%arg0: i32, %arg1: i32) -> (i32, i32, i32) {
    %c0_i32 = arith.constant 0 : i32
    %c0_i32_0 = arith.constant 0 : i32
    return %arg0, %arg1, %c0_i32 : i32, i32, i32
  }
}

</mosaic_0001>

<bundles_post_ra>
// kernel: self_attention1_forward.1
= control target key start
LH: loop header
LB: loop body
LE: loop exit
PB: predicated region body
PF: predicated region fallthrough
CT: control target
= control target key end

     0   :  { %14 = vsyncpa [#allocation5], 0  ;;  %s2622_s0 = inlined_call_operand.vmem [shape: f32[2], index: 0, kind: input, shape index: {}]   ;;  %s2623_s1 = inlined_call_operand.vmem [shape: f32[8,8,1], index: 1, kind: input, shape index: {}]   ;;  %s2624_s2 = inlined_call_operand.vmem [shape: f32[8,8,128], index: 2, kind: input, shape index: {}]   ;;  %s2625_s3 = inlined_call_operand.hbm [shape: f32[8,128,128], index: 3, kind: input, shape index: {}]   ;;  %s2626_s4 = inlined_call_operand.hbm [shape: f32[8,16,128], index: 4, kind: input, shape index: {}]   ;;  %s2627_s5 = inlined_call_operand.hbm [shape: f32[128,128], index: 5, kind: input, shape index: {}]   ;;  %s2628_s6 = inlined_call_operand.vmem [shape: f32[1,128], index: 6, kind: input, shape index: {}]   ;;  %s2629_s7 = inlined_call_operand.hbm [shape: f32[128,128], index: 7, kind: input, shape index: {}]   ;;  %s2630_s8 = inlined_call_operand.vmem [shape: f32[1,128], index: 8, kind: input, shape index: {}]   ;;  %s2631_s9 = inlined_call_operand.hbm [shape: f32[8,16,128], index: 9, kind: output, shape index: {}]  }
   0x1   :  { %15 = vsyncpa [#allocation3], 0 }
   0x2   :  { %16 = vsyncpa [#allocation8], 0 }
   0x3   :  { %17 = vsyncpa [#allocation11], 0 }
   0x4   :  { %18 = vsyncpa [#allocation4], 0  ;;  %s49_s11 = sshll.u32 %s2626_s4, 4  ;;  %s2090_s12 = smov [#allocation7]   ;;  %s50_s11 = int_to_ptr.hbm [resolvable:$true] %s49_s11 }
   0x5   :  { %s51_s13 = sshll.u32 %s2090_s12, 4  ;;  %s24_s16 = sshll.u32 %s2622_s0, 4  ;;  %s52_s13 = int_to_ptr.vmem [resolvable:$true] %s51_s13  ;;  %s25_s16 = int_to_ptr.vmem [resolvable:$true] %s24_s16 }
   0x6   :  { %s2091_s17 = smov 128   ;;  %s2092_s18 = smov 8  }
   0x7   :  { %57 = dma.hbm_to_vmem [thread:$0]  %s50_s11, 2048, %s52_s13, [#allocation8], %s2091_s17, %s2091_s17, %s2092_s18  }
   0x8   :  { %s2093_s19 = smov [#allocation2]   ;;  %s36_s4 = sshll.u32 %s2625_s3, 4  ;;  %s37_s4 = int_to_ptr.hbm [resolvable:$true] %s36_s4 }
   0x9   :  { %27 = dma.vmem_to_smem %s25_s16, 16, %s2093_s19, [#allocation5]  }
   0xa   :  { %s2094_s22 = smov [#allocation6]   ;;  %s62_s0 = sshll.u32 %s2627_s5, 4  ;;  %s63_s0 = int_to_ptr.hbm [resolvable:$true] %s62_s0 }
   0xb   :  { %s38_s23 = sshll.u32 %s2094_s22, 4  ;;  %s2095_s26 = smov [#allocation9]   ;;  %s39_s23 = int_to_ptr.vmem [resolvable:$true] %s38_s23 }
   0xc   :  { %44 = dma.hbm_to_vmem [thread:$0]  %s37_s4, 16384, %s39_s23, [#allocation3], %s2091_s17, %s2091_s17, %s2092_s18  }
   0xd   :  { %s64_s27 = sshll.u32 %s2095_s26, 4  ;;  %s77_s30 = sshll.u32 %s2629_s7, 4  ;;  %s65_s27 = int_to_ptr.vmem [resolvable:$true] %s64_s27  ;;  %s78_s30 = int_to_ptr.hbm [resolvable:$true] %s77_s30 }
   0xe   :  { %70 = dma.hbm_to_vmem [thread:$0]  %s63_s0, 2048, %s65_s27, [#allocation8], %s2091_s17, %s2091_s17, %s2092_s18  }
   0xf   :  { %s2096_s3 = smov [#allocation10]  }
  0x10   :  { %s79_s10 = sshll.u32 %s2096_s3, 4  ;;  %s80_s10 = int_to_ptr.vmem [resolvable:$true] %s79_s10 }
  0x11   :  { %85 = dma.hbm_to_vmem [thread:$0]  %s78_s30, 2048, %s80_s10, [#allocation11], %s2091_s17, %s2091_s17, %s2092_s18  }
  0x12   :  { %2080 = dma.done.wait [#allocation5], 16  }
  0x13   :  { %2081 = vsyncadd [#allocation5], 4294967280 }
  0x14   :  { %2082 = dma.done.wait [#allocation3], 16384  }
  0x15   :  { %2083 = vsyncadd [#allocation3], 4294950912 }
  0x16   :  { %2084 = dma.done.wait [#allocation8], 4096  }
  0x17   :  { %2085 = vsyncadd [#allocation8], 4294963200 }
  0x18   :  { %2086 = dma.done.wait [#allocation11], 2048  }
  0x19   :  { %2087 = vsyncadd [#allocation11], 4294965248 }
  0x1a   :  { %108 = sfence }
  0x1b   :  { %s109_s5 = sld [smem:[#allocation2]]  ;;  %v2097_v0 = vmov 0   ;;  %v115_v1 = vld [vmem:[%s2623_s1 + $0x20] sm:$0xff]  ;;  %v113_v2 = vld [vmem:[%s2623_s1 + $0x10] sm:$0xff]  ;;  %v114_v4 = vld [vmem:[%s2623_s1 + $0x18] sm:$0xff]  ;;  %vm241_vm0 = vcmask 7168  }
  0x1c   :  { %1816 = vset.pattern.permute.xlu2 %v2097_v0  ;;  %1815 = vset.pattern.permute.xlu1 %v2097_v0  ;;  %s1804_s7 = sld [smem:[#allocation2 + $0x1]]  ;;  %v111_v3 = vld [vmem:[%s2623_s1] sm:$0xff]  ;;  %v112_v5 = vld [vmem:[%s2623_s1 + $0x8] sm:$0xff]  ;;  %v117_v12 = vld [vmem:[%s2623_s1 + $0x30] sm:$0xff]  ;;  %vm374_vm1 = vcmask 1041409   ;;  %vm376_vm2 = vcmask 1042434  }
  0x1d   :  { %1814 = vset.pattern.permute.xlu0 %v2097_v0  ;;  %v116_v7 = vld [vmem:[%s2623_s1 + $0x28] sm:$0xff]  ;;  %v118_v35 = vld [vmem:[%s2623_s1 + $0x38] sm:$0xff]  ;;  %v312_v53 = vld [vmem:[#allocation9 + $0x70] sm:$0xff]  ;;  %vm378_vm3 = vcmask 1043459   ;;  %vm380_vm4 = vcmask 1044484   ;;  %vm382_vm5 = vcmask 1045509  }
  0x1e   :  { %v313_v50 = vld [vmem:[#allocation9 + $0x78] sm:$0xff]  ;;  %vm384_vm6 = vcmask 1046534   ;;  %vm386_vm7 = vcmask 1047559   ;;  %s1788_s24 = sshll.u32 %s2631_s9, 4  ;;  %s1789_s24 = int_to_ptr.hbm [resolvable:$true] %s1788_s24 }
  0x1f   :  { %412 = vmatpush.xpose.msra.mxu0 %v313_v50 }
  0x21   :  { %v119_v6 = vstv %s109_s5 }
  0x22   :  { %v124_v8 = vmul.f32 %v119_v6, %v115_v1  ;;  %v128_v9 = vstv %s1804_s7  ;;  %v122_v10 = vmul.f32 %v119_v6, %v113_v2  ;;  %v120_v11 = vmul.f32 %v119_v6, %v111_v3 }
  0x23   :  { %v123_v13 = vmul.f32 %v119_v6, %v114_v4  ;;  %v121_v14 = vmul.f32 %v119_v6, %v112_v5  ;;  %v125_v18 = vmul.f32 %v119_v6, %v116_v7  ;;  %v126_v19 = vmul.f32 %v119_v6, %v117_v12  ;;  %413 = vmatpush.xpose.msra.mxu0 %v312_v53  ;;  %v138_v53 = vld [vmem:[%s2624_s2 + $0x8] sm:$0xff] }
  0x24   :  { %v133_v15 = vadd.f32 %v128_v9, %v124_v8  ;;  %v131_v16 = vadd.f32 %v128_v9, %v122_v10  ;;  %v129_v17 = vadd.f32 %v128_v9, %v120_v11  ;;  %v127_v42 = vmul.f32 %v119_v6, %v118_v35  ;;  %v141_v35 = vld [vmem:[%s2624_s2 + $0x20] sm:$0xff] }
  0x25   :  { %v132_v22 = vadd.f32 %v128_v9, %v123_v13  ;;  %v130_v23 = vadd.f32 %v128_v9, %v121_v14  ;;  %v134_v26 = vadd.f32 %v128_v9, %v125_v18  ;;  %v135_v31 = vadd.f32 %v128_v9, %v126_v19 }
  0x26   :  { %167 = vperm.xlu2 %1816, %v133_v15   ;;  %157 = vperm.xlu1 %1815, %v131_v16   ;;  %v256_v20 = vsel %vm241_vm0, %v131_v16, 0.0  ;;  %v242_v21 = vsel %vm241_vm0, %v129_v17, 0.0  ;;  %v270_v39 = vsel %vm241_vm0, %v133_v15, 0.0  ;;  %v136_v52 = vadd.f32 %v128_v9, %v127_v42 }
  0x27   :  { %v257_v24 = vrot.slane %v256_v20, 4  ;;  %147 = vperm.xlu0 %1814, %v129_v17   ;;  %v243_v25 = vrot.slane %v242_v21, 4  ;;  %v263_v27 = vsel %vm241_vm0, %v132_v22, 0.0  ;;  %v249_v28 = vsel %vm241_vm0, %v130_v23, 0.0 }
  0x28   :  { %v264_v30 = vrot.slane %v263_v27, 4  ;;  %v277_v33 = vsel %vm241_vm0, %v134_v26, 0.0  ;;  %v250_v34 = vrot.slane %v249_v28, 4  ;;  %v284_v38 = vsel %vm241_vm0, %v135_v31, 0.0 }
  0x29   :  { %v244_v29 = vadd.f32 %v243_v25, %v242_v21  ;;  %v258_v32 = vadd.f32 %v257_v24, %v256_v20  ;;  %v278_v41 = vrot.slane %v277_v33, 4  ;;  %v285_v45 = vrot.slane %v284_v38, 4  ;;  %v311_v21 = vld [vmem:[#allocation9 + $0x68] sm:$0xff]  ;;  %v308_v24 = vld [vmem:[#allocation9 + $0x50] sm:$0xff] }
  0x2a   :  { %v265_v37 = vadd.f32 %v264_v30, %v263_v27  ;;  %v251_v40 = vadd.f32 %v250_v34, %v249_v28  ;;  %v271_v47 = vrot.slane %v270_v39, 4  ;;  %v291_v60 = vsel %vm241_vm0, %v136_v52, 0.0  ;;  %414 = vmatpush.xpose.msra.mxu0 %v311_v21  ;;  %v307_v25 = vld [vmem:[#allocation9 + $0x48] sm:$0xff]  ;;  %v305_v27 = vld [vmem:[#allocation9 + $0x38] sm:$0xff]  ;;  %v304_v28 = vld [vmem:[#allocation9 + $0x30] sm:$0xff] }
  0x2b   :  { %v245_v36 = vrot.slane %v244_v29, 2  ;;  %v259_v44 = vrot.slane %v258_v32, 2  ;;  %v279_v51 = vadd.f32 %v278_v41, %v277_v33  ;;  %v286_v54 = vadd.f32 %v285_v45, %v284_v38  ;;  %v302_v30 = vld [vmem:[#allocation9 + $0x20] sm:$0xff]  ;;  %v299_v34 = vld [vmem:[#allocation9 + $0x8] sm:$0xff] }
  0x2c   :  { %v266_v46 = vrot.slane %v265_v37, 2  ;;  %v252_v49 = vrot.slane %v251_v40, 2  ;;  %v272_v58 = vadd.f32 %v271_v47, %v270_v39  ;;  %v292_v2 = vrot.slane %v291_v60, 4  ;;  %v137_v38 = vld [vmem:[%s2624_s2] sm:$0xff] }
  0x2d   :  { %v246_v43 = vadd.f32 %v245_v36, %v244_v29  ;;  %v260_v56 = vadd.f32 %v259_v44, %v258_v32  ;;  %v280_v63 = vrot.slane %v279_v51, 2  ;;  %v287_v0 = vrot.slane %v286_v54, 2  ;;  %v303_v29 = vld [vmem:[#allocation9 + $0x28] sm:$0xff]  ;;  %v300_v32 = vld [vmem:[#allocation9 + $0x10] sm:$0xff] }
  0x2e   :  { %172 = vperm.xlu2 %1816, %v134_v26   ;;  %162 = vperm.xlu1 %1815, %v132_v22   ;;  %v267_v57 = vadd.f32 %v266_v46, %v265_v37  ;;  %v253_v59 = vadd.f32 %v252_v49, %v251_v40  ;;  %v273_v1 = vrot.slane %v272_v58, 2  ;;  %v293_v8 = vadd.f32 %v292_v2, %v291_v60  ;;  %v310_v22 = vld [vmem:[#allocation9 + $0x60] sm:$0xff]  ;;  %v139_v36 = vld [vmem:[%s2624_s2 + $0x10] sm:$0xff] }
  0x2f   :  { %152 = vperm.xlu0 %1814, %v130_v23   ;;  %v247_v48 = vrot.slane %v246_v43, 1  ;;  %v261_v61 = vrot.slane %v260_v56, 1  ;;  %v281_v6 = vadd.f32 %v280_v63, %v279_v51  ;;  %v288_v7 = vadd.f32 %v287_v0, %v286_v54  ;;  %415 = vmatpush.xpose.msra.mxu0 %v310_v22  ;;  %v309_v23 = vld [vmem:[#allocation9 + $0x58] sm:$0xff]  ;;  %v306_v26 = vld [vmem:[#allocation9 + $0x40] sm:$0xff] }
  0x30   :  { %v268_v62 = vrot.slane %v267_v57, 1  ;;  %v254_v3 = vrot.slane %v253_v59, 1  ;;  %v274_v10 = vadd.f32 %v273_v1, %v272_v58  ;;  %v294_v14 = vrot.slane %v293_v8, 2  ;;  %v298_v37 = vld [vmem:[#allocation9] sm:$0xff]  ;;  %v140_v51 = vld [vmem:[%s2624_s2 + $0x18] sm:$0xff] }
  0x31   :  { %v248_v55 = vadd.f32 %v247_v48, %v246_v43  ;;  %v262_v4 = vadd.f32 %v261_v61, %v260_v56  ;;  %v282_v11 = vrot.slane %v281_v6, 1  ;;  %v289_v12 = vrot.slane %v288_v7, 1  ;;  %v142_v43 = vld [vmem:[%s2624_s2 + $0x28] sm:$0xff] }
  0x32   :  { %v269_v5 = vadd.f32 %v268_v62, %v267_v57  ;;  %v255_v9 = vadd.f32 %v254_v3, %v253_v59  ;;  %v275_v13 = vrot.slane %v274_v10, 1  ;;  %v295_v18 = vadd.f32 %v294_v14, %v293_v8  ;;  %v143_v8 = vld [vmem:[%s2624_s2 + $0x30] sm:$0xff] }
  0x33   :  { %v283_v15 = vadd.f32 %v282_v11, %v281_v6  ;;  %v290_v16 = vadd.f32 %v289_v12, %v288_v7  ;;  %416 = vmatpush.xpose.msra.mxu0 %v309_v23 }
  0x34   :  { %v276_v17 = vadd.f32 %v275_v13, %v274_v10  ;;  %v296_v19 = vrot.slane %v295_v18, 1 }
  0x36   :  { %182 = vperm.xlu1 %1815, %v136_v52   ;;  %317 = vperm.xlu2 %1816, %v248_v55   ;;  %v297_v20 = vadd.f32 %v296_v19, %v295_v18 }
  0x37   :  { %177 = vperm.xlu0 %1814, %v135_v31   ;;  %417 = vmatpush.xpose.msra.mxu0 %v308_v24  ;;  %v301_v31 = vld [vmem:[#allocation9 + $0x18] sm:$0xff] }
  0x3b   :  { %418 = vmatpush.xpose.msra.mxu0 %v307_v25 }
  0x3e   :  { %327 = vperm.xlu1 %1815, %v262_v4   ;;  %332 = vperm.xlu2 %1816, %v269_v5   ;;  %v144_v5 = vld [vmem:[%s2624_s2 + $0x38] sm:$0xff] }
  0x3f   :  { %322 = vperm.xlu0 %1814, %v255_v9   ;;  %419 = vmatpush.xpose.msra.mxu0 %v306_v26 }
  0x43   :  { %420 = vmatpush.xpose.msra.mxu0 %v305_v27 }
  0x46   :  { %342 = vperm.xlu1 %1815, %v283_v15   ;;  %347 = vperm.xlu2 %1816, %v290_v16  }
  0x47   :  { %337 = vperm.xlu0 %1814, %v276_v17   ;;  %421 = vmatpush.xpose.msra.mxu0 %v304_v28 }
  0x4b   :  { %422 = vmatpush.xpose.msra.mxu0 %v303_v29 }
  0x4f   :  { %352 = vperm.xlu0 %1814, %v297_v20   ;;  %423 = vmatpush.xpose.msra.mxu0 %v302_v30 }
  0x53   :  { %424 = vmatpush.xpose.msra.mxu0 %v301_v31 }
  0x57   :  { %425 = vmatpush.xpose.msra.mxu0 %v300_v32 }
  0x5b   :  { %426 = vmatpush.xpose.msra.mxu0 %v299_v34 }
  0x5f   :  { %427 = vmatpush.xpose.msra.mxu0 %v298_v37 }
  0x80   :  { %v168_v33 = vpop.permute.xlu2 %167 }
  0x81   :  { %v189_v40 = vmul.f32 %v168_v33, %v141_v35 }
  0x83   :  { %v217_v48 = vrot.slane %v189_v40, 4 }
  0x85   :  { %v218_v55 = vadd.f32 %v217_v48, %v189_v40 }
  0x87   :  { %v219_v0 = vrot.slane %v218_v55, 2 }
  0x88   :  { %v173_v46 = vpop.permute.xlu2 %172 }
  0x89   :  { %v190_v49 = vmul.f32 %v173_v46, %v142_v43  ;;  %v220_v11 = vadd.f32 %v219_v0, %v218_v55 }
  0x8b   :  { %v223_v56 = vrot.slane %v190_v49, 4  ;;  %v221_v24 = vrot.slane %v220_v11, 1 }
  0x8d   :  { %v224_v1 = vadd.f32 %v223_v56, %v190_v49 }
  0x8f   :  { %v225_v12 = vrot.slane %v224_v1, 2 }
  0x91   :  { %v226_v25 = vadd.f32 %v225_v12, %v224_v1 }
  0x93   :  { %v227_v35 = vrot.slane %v226_v25, 1 }
  0x98   :  { %v158_v39 = vpop.permute.xlu1 %157 }
  0x99   :  { %v187_v41 = vmul.f32 %v158_v39, %v139_v36  ;;  %v148_v42 = vpop.permute.xlu0 %147 }
  0x9a   :  { %v185_v44 = vmul.f32 %v148_v42, %v137_v38  ;;  %v222_v38 = vadd.f32 %v221_v24, %v220_v11 }
  0x9b   :  { %v205_v45 = vrot.slane %v187_v41, 4 }
  0x9c   :  { %v193_v47 = vrot.slane %v185_v44, 4 }
  0x9d   :  { %v206_v52 = vadd.f32 %v205_v45, %v187_v41 }
  0x9e   :  { %v194_v50 = vadd.f32 %v193_v47, %v185_v44  ;;  %v228_v44 = vadd.f32 %v227_v35, %v226_v25 }
  0x9f   :  { %v207_v61 = vrot.slane %v206_v52, 2 }
  0xa0   :  { %v163_v54 = vpop.permute.xlu1 %162  ;;  %v195_v59 = vrot.slane %v194_v50, 2 }
  0xa1   :  { %v188_v57 = vmul.f32 %v163_v54, %v140_v51  ;;  %v153_v58 = vpop.permute.xlu0 %152  ;;  %v208_v6 = vadd.f32 %v207_v61, %v206_v52  ;;  %v318_v51 = vpop.permute.xlu2 %317 }
  0xa2   :  { %v186_v60 = vmul.f32 %v153_v58, %v138_v53  ;;  %v196_v3 = vadd.f32 %v195_v59, %v194_v50  ;;  %v1942_v53 = vld [vmem:[%s2628_s6] ss:$0 sm:$0xff] }
  0xa3   :  { %v211_v62 = vrot.slane %v188_v57, 4  ;;  %v209_v19 = vrot.slane %v208_v6, 1  ;;  %v358_v59 = vmul.f32 %v1942_v53, %v318_v51 }
  0xa4   :  { %v199_v63 = vrot.slane %v186_v60, 4  ;;  %v197_v16 = vrot.slane %v196_v3, 1 }
  0xa5   :  { %v212_v2 = vadd.f32 %v211_v62, %v188_v57  ;;  %v210_v30 = vadd.f32 %v209_v19, %v208_v6 }
  0xa6   :  { %v200_v4 = vadd.f32 %v199_v63, %v186_v60  ;;  %v198_v27 = vadd.f32 %v197_v16, %v196_v3 }
  0xa7   :  { %v213_v7 = vrot.slane %v212_v2, 2 }
  0xa8   :  { %v201_v9 = vrot.slane %v200_v4, 2  ;;  %v183_v10 = vpop.permute.xlu1 %182 }
  0xa9   :  { %v214_v13 = vadd.f32 %v213_v7, %v212_v2  ;;  %v192_v14 = vmul.f32 %v183_v10, %v144_v5  ;;  %v178_v15 = vpop.permute.xlu0 %177  ;;  %v333_v56 = vpop.permute.xlu2 %332 }
  0xaa   :  { %v202_v17 = vadd.f32 %v201_v9, %v200_v4  ;;  %v191_v18 = vmul.f32 %v178_v15, %v143_v8  ;;  %v361_v63 = vmul.f32 %v1942_v53, %v333_v56  ;;  %v1231_v56 = vld [vmem:[#allocation6 + $0x8] sm:$0xff] }
  0xab   :  { %v235_v20 = vrot.slane %v192_v14, 4  ;;  %v215_v21 = vrot.slane %v214_v13, 1 }
  0xac   :  { %v203_v22 = vrot.slane %v202_v17, 1  ;;  %v229_v23 = vrot.slane %v191_v18, 4  ;;  %v401_v5 = vrot.slane %v361_v63, 5 }
  0xad   :  { %v236_v26 = vadd.f32 %v235_v20, %v192_v14  ;;  %v216_v32 = vadd.f32 %v215_v21, %v214_v13 }
  0xae   :  { %v204_v28 = vadd.f32 %v203_v22, %v202_v17  ;;  %v230_v29 = vadd.f32 %v229_v23, %v191_v18  ;;  %v455_v23 = vlaneseq }
  0xaf   :  { %v237_v31 = vrot.slane %v236_v26, 2 }
  0xb0   :  { %v231_v33 = vrot.slane %v230_v29, 2  ;;  %v375_v34 = vsel %vm374_vm1, %v204_v28, %v198_v27  ;;  %v328_v52 = vpop.permute.xlu1 %327  ;;  %v2249_v24 = vshrl.u32 %v455_v23, 7 }
  0xb1   :  { %v238_v36 = vadd.f32 %v237_v31, %v236_v26  ;;  %v377_v37 = vsel %vm376_vm2, %v210_v30, %v375_v34  ;;  %v323_v50 = vpop.permute.xlu0 %322  ;;  %v360_v57 = vmul.f32 %v1942_v53, %v328_v52  ;;  %v348_v6 = vpop.permute.xlu2 %347 }
  0xb2   :  { %v232_v39 = vadd.f32 %v231_v33, %v230_v29  ;;  %v379_v40 = vsel %vm378_vm3, %v216_v32, %v377_v37  ;;  %v359_v54 = vmul.f32 %v1942_v53, %v323_v50  ;;  %v364_v10 = vmul.f32 %v1942_v53, %v348_v6  ;;  %1817 = vset.pattern.permute.xlu0 %v2249_v24  ;;  %v1234_v6 = vld [vmem:[#allocation6 + $0x20] sm:$0xff] }
  0xb3   :  { %v239_v41 = vrot.slane %v238_v36, 1  ;;  %v381_v43 = vsel %vm380_vm4, %v222_v38, %v379_v40  ;;  %v399_v60 = vrot.slane %v360_v57, 6  ;;  %v2252_v25 = vadd.s32 32, %v2249_v24 }
  0xb4   :  { %v233_v42 = vrot.slane %v232_v39, 1  ;;  %v383_v47 = vsel %vm382_vm5, %v228_v44, %v381_v43  ;;  %v397_v58 = vrot.slane %v359_v54, 7  ;;  %v407_v14 = vrot.slane %v364_v10, 2 }
  0xb5   :  { %v240_v45 = vadd.f32 %v239_v41, %v238_v36  ;;  %v2256_v26 = vadd.s32 24, %v2249_v24  ;;  %1821 = vset.pattern.permute.xlu1 %v2252_v25  ;;  %v2264_v40 = vadd.s32 56, %v2249_v24  ;;  %v2267_v41 = vadd.s32 48, %v2249_v24 }
  0xb6   :  { %v234_v46 = vadd.f32 %v233_v42, %v232_v39  ;;  %v398_v0 = vsel %vm374_vm1, %v397_v58, %v358_v59  ;;  %v2270_v42 = vadd.s32 8, %v2249_v24  ;;  %v2276_v43 = vadd.s32 80, %v2249_v24 }
  0xb7   :  { %v400_v2 = vsel %vm376_vm2, %v399_v60, %v398_v0  ;;  %1820 = vset.pattern.permute.xlu2 %v2256_v26  ;;  %v2279_v44 = vadd.s32 72, %v2249_v24  ;;  %v2303_v50 = vadd.s32 112, %v2249_v24  ;;  %v2306_v51 = vadd.s32 64, %v2249_v24 }
  0xb8   :  { %v385_v48 = vsel %vm384_vm6, %v234_v46, %v383_v47  ;;  %v343_v61 = vpop.permute.xlu1 %342  ;;  %v402_v8 = vsel %vm378_vm3, %v401_v5, %v400_v2  ;;  %v2288_v46 = vadd.s32 96, %v2249_v24  ;;  %v2291_v47 = vadd.s32 88, %v2249_v24 }
  0xb9   :  { %v387_v49 = vsel %vm386_vm7, %v240_v45, %v385_v48  ;;  %v338_v55 = vpop.permute.xlu0 %337  ;;  %v363_v1 = vmul.f32 %v1942_v53, %v343_v61  ;;  %v2282_v45 = vadd.s32 16, %v2249_v24  ;;  %v2294_v48 = vadd.s32 40, %v2249_v24 }
  0xba   :  { %428 = vmatmul.f32.vlgmr.msra.gmra.mxu0 %v387_v49  ;;  %v362_v62 = vmul.f32 %v1942_v53, %v338_v55  ;;  %v2300_v49 = vadd.s32 120, %v2249_v24  ;;  %v2312_v52 = vadd.s32 104, %v2249_v24  ;;  %v1230_v55 = vld [vmem:[#allocation6] sm:$0xff] }
  0xbb   :  { %v405_v7 = vrot.slane %v363_v1, 3 }
  0xbc   :  { %v403_v3 = vrot.slane %v362_v62, 4  ;;  %v1232_v62 = vld [vmem:[#allocation6 + $0x10] sm:$0xff] }
  0xbe   :  { %v404_v11 = vsel %vm380_vm4, %v403_v3, %v402_v8 }
  0xbf   :  { %v406_v13 = vsel %vm382_vm5, %v405_v7, %v404_v11 }
  0xc0   :  { %v408_v15 = vsel %vm384_vm6, %v407_v14, %v406_v13 }
  0xc1   :  { %v353_v4 = vpop.permute.xlu0 %352 }
  0xc2   :  { %v365_v9 = vmul.f32 %v1942_v53, %v353_v4  ;;  %v1233_v4 = vld [vmem:[#allocation6 + $0x18] sm:$0xff] }
  0xc4   :  { %v409_v12 = vrot.slane %v365_v9, 1  ;;  %v1235_v9 = vld [vmem:[#allocation6 + $0x28] sm:$0xff] }
  0xc6   :  { %v410_v16 = vsel %vm386_vm7, %v409_v12, %v408_v15  ;;  %v1236_v12 = vld [vmem:[#allocation6 + $0x30] sm:$0xff] }
 0x137   :  { %v429_v17 = vpop.f32.mrf.mxu0 }
 0x138   :  { %v430_v18 = vadd.f32 %v429_v17, %v410_v16  ;;  %v1237_v16 = vld [vmem:[#allocation6 + $0x38] sm:$0xff] }
 0x13a   :  { %432 = vmax.xlane.f32.xlu1 %v430_v18 }
 0x1ad   :  { %v433_v19 = vpop.xlane.xlu1 %432 }
 0x1ae   :  { %v434_v20 = vsub.f32 %v430_v18, %v433_v19 }
 0x1b0   :  { %v435_v21 = vmul.f32 1.442695, %v434_v20 }
 0x1b2   :  { %1944 = vpow2.f32 %v435_v21 }
 0x1b8   :  { %v1945_v22 = vpop.eup %1944 }
 0x1b9   :  { %437 = vadd.xlane.f32.xlu2 %v1945_v22 }
 0x22c   :  { %v438_v27 = vpop.xlane.xlu2 %437 }
 0x22d   :  { %1946 = vrcp.f32 %v438_v27  ;;  %v450_v31 = vand.u32 2147483648, %v438_v27  ;;  %v448_v33 = vand.u32 2147483647, %v438_v27  ;;  %vm444_vm9 = vweird.f32 %v438_v27 }
 0x22f   :  { %v451_v35 = vor.u32 1.1754944e-38, %v450_v31  ;;  %vm449_vm11 = vcmp.eq.f32.partialorder %v448_v33, 8.507059e+37  ;;  %v1240_v33 = vld [vmem:[#allocation6 + $0x50] sm:$0xff] }
 0x233   :  { %v1947_v28 = vpop.eup %1946 }
 0x234   :  { %v440_v29 = vmul.f32 %v1947_v28, %v438_v27  ;;  %vm445_vm8 = vweird.f32 %v1947_v28 }
 0x235   :  { %vm446_vm10 = vmor %vm444_vm9, %vm445_vm8 }
 0x236   :  { %v441_v30 = vsub.f32 1.0, %v440_v29 }
 0x238   :  { %v442_v32 = vmul.f32 %v1947_v28, %v441_v30  ;;  %v1239_v30 = vld [vmem:[#allocation6 + $0x48] sm:$0xff] }
 0x23a   :  { %v443_v34 = vadd.f32 %v1947_v28, %v442_v32 }
 0x23c   :  { %v447_v36 = vsel %vm446_vm10, %v1947_v28, %v443_v34  ;;  %v1238_v28 = vld [vmem:[#allocation6 + $0x40] sm:$0xff] }
 0x23d   :  { %v452_v37 = vsel %vm449_vm11, %v451_v35, %v447_v36  ;;  %v1241_v36 = vld [vmem:[#allocation6 + $0x58] sm:$0xff] }
 0x23e   :  { %v2260_v38 = vmul.f32 %v1945_v22, %v452_v37 }
 0x240   :  { %v454_v39 = vperm.slane %v2260_v38, 0  ;;  %v2318_v53 = vperm.slane %v2260_v38, 1  ;;  %v2344_v61 = vperm.slane %v2260_v38, 2 }
 0x242   :  { %483 = vperm.xlu1 %1821, %v454_v39   ;;  %477 = vperm.xlu2 %1820, %v454_v39  }
 0x243   :  { %459 = vperm.xlu0 %1817, %v454_v39  }
 0x24a   :  { %1824 = vset.pattern.permute.xlu1 %v2264_v40  ;;  %1823 = vset.pattern.permute.xlu2 %v2267_v41 }
 0x24b   :  { %1818 = vset.pattern.permute.xlu0 %v2270_v42 }
 0x252   :  { %501 = vperm.xlu1 %1824, %v454_v39   ;;  %495 = vperm.xlu2 %1823, %v454_v39  }
 0x253   :  { %465 = vperm.xlu0 %1818, %v454_v39  }
 0x25a   :  { %1827 = vset.pattern.permute.xlu1 %v2276_v43  ;;  %1826 = vset.pattern.permute.xlu2 %v2279_v44 }
 0x25b   :  { %1819 = vset.pattern.permute.xlu0 %v2282_v45 }
 0x262   :  { %519 = vperm.xlu1 %1827, %v454_v39   ;;  %513 = vperm.xlu2 %1826, %v454_v39  }
 0x263   :  { %471 = vperm.xlu0 %1819, %v454_v39  }
 0x26a   :  { %1829 = vset.pattern.permute.xlu1 %v2288_v46  ;;  %1828 = vset.pattern.permute.xlu2 %v2291_v47 }
 0x26b   :  { %1822 = vset.pattern.permute.xlu0 %v2294_v48 }
 0x272   :  { %531 = vperm.xlu1 %1829, %v454_v39   ;;  %525 = vperm.xlu2 %1828, %v454_v39  }
 0x273   :  { %489 = vperm.xlu0 %1822, %v454_v39  }
 0x27a   :  { %1832 = vset.pattern.permute.xlu1 %v2300_v49  ;;  %1831 = vset.pattern.permute.xlu2 %v2303_v50 }
 0x27b   :  { %1825 = vset.pattern.permute.xlu0 %v2306_v51 }
 0x282   :  { %549 = vperm.xlu1 %1832, %v454_v39   ;;  %543 = vperm.xlu2 %1831, %v454_v39  }
 0x283   :  { %507 = vperm.xlu0 %1825, %v454_v39  }
 0x28a   :  { %1834 = vset.pattern.permute.xlu1 %v2270_v42  ;;  %1833 = vset.pattern.permute.xlu2 %v2249_v24 }
 0x28b   :  { %1830 = vset.pattern.permute.xlu0 %v2312_v52 }
 0x292   :  { %562 = vperm.xlu1 %1834, %v2318_v53   ;;  %556 = vperm.xlu2 %1833, %v2318_v53  }
 0x293   :  { %537 = vperm.xlu0 %1830, %v454_v39  }
 0x29a   :  { %1837 = vset.pattern.permute.xlu1 %v2252_v25  ;;  %1836 = vset.pattern.permute.xlu2 %v2256_v26 }
 0x29b   :  { %1835 = vset.pattern.permute.xlu0 %v2282_v45 }
 0x29c   :  { %v478_v2 = vpop.permute.xlu2 %477 }
 0x29d   :  { %v1361_v5 = vmul.f32 %v1233_v4, %v478_v2  ;;  %v1243_v2 = vld [vmem:[#allocation6 + $0x68] sm:$0xff]  ;;  %v1244_v4 = vld [vmem:[#allocation6 + $0x70] sm:$0xff] }
 0x2a2   :  { %580 = vperm.xlu1 %1837, %v2318_v53   ;;  %574 = vperm.xlu2 %1836, %v2318_v53  }
 0x2a3   :  { %568 = vperm.xlu0 %1835, %v2318_v53  }
 0x2aa   :  { %1839 = vset.pattern.permute.xlu1 %v2267_v41  ;;  %1838 = vset.pattern.permute.xlu2 %v2294_v48 }
 0x2ab   :  { %1840 = vset.pattern.permute.xlu0 %v2264_v40 }
 0x2ac   :  { %v496_v7 = vpop.permute.xlu2 %495 }
 0x2ad   :  { %v1364_v17 = vmul.f32 %v1236_v12, %v496_v7 }
 0x2b2   :  { %592 = vperm.xlu1 %1839, %v2318_v53   ;;  %586 = vperm.xlu2 %1838, %v2318_v53  }
 0x2b3   :  { %598 = vperm.xlu0 %1840, %v2318_v53  }
 0x2b4   :  { %v484_v3 = vpop.permute.xlu1 %483 }
 0x2b5   :  { %v460_v54 = vpop.permute.xlu0 %459  ;;  %v1362_v10 = vmul.f32 %v1234_v6, %v484_v3 }
 0x2b6   :  { %v1358_v58 = vmul.f32 %v1230_v55, %v460_v54  ;;  %v1242_v55 = vld [vmem:[#allocation6 + $0x60] sm:$0xff] }
 0x2ba   :  { %1842 = vset.pattern.permute.xlu1 %v2279_v44  ;;  %1841 = vset.pattern.permute.xlu2 %v2306_v51 }
 0x2bb   :  { %1845 = vset.pattern.permute.xlu0 %v2288_v46 }
 0x2bc   :  { %v514_v19 = vpop.permute.xlu2 %513 }
 0x2bd   :  { %v1367_v34 = vmul.f32 %v1239_v30, %v514_v19 }
 0x2c2   :  { %610 = vperm.xlu1 %1842, %v2318_v53   ;;  %604 = vperm.xlu2 %1841, %v2318_v53  }
 0x2c3   :  { %628 = vperm.xlu0 %1845, %v2318_v53  }
 0x2c4   :  { %v502_v11 = vpop.permute.xlu1 %501 }
 0x2c5   :  { %v466_v57 = vpop.permute.xlu0 %465  ;;  %v1365_v20 = vmul.f32 %v1237_v16, %v502_v11 }
 0x2c6   :  { %v1359_v59 = vmul.f32 %v1231_v56, %v466_v57 }
 0x2c8   :  { %v1486_v60 = vadd.f32 %v1359_v59, %v1358_v58 }
 0x2ca   :  { %1844 = vset.pattern.permute.xlu1 %v2291_v47  ;;  %1843 = vset.pattern.permute.xlu2 %v2276_v43 }
 0x2cb   :  { %1850 = vset.pattern.permute.xlu0 %v2270_v42 }
 0x2cc   :  { %v526_v27 = vpop.permute.xlu2 %525 }
 0x2d2   :  { %622 = vperm.xlu1 %1844, %v2318_v53   ;;  %616 = vperm.xlu2 %1843, %v2318_v53  }
 0x2d3   :  { %659 = vperm.xlu0 %1850, %v2344_v61  }
 0x2d4   :  { %v520_v22 = vpop.permute.xlu1 %519 }
 0x2d5   :  { %v472_v63 = vpop.permute.xlu0 %471  ;;  %v1368_v37 = vmul.f32 %v1240_v33, %v520_v22 }
 0x2d6   :  { %v1360_v0 = vmul.f32 %v1232_v62, %v472_v63  ;;  %v2365_v62 = vperm.slane %v2260_v38, 3  ;;  %v1246_v63 = vld [vmem:[#allocation6 + $0x80] sm:$0xff] }
 0x2d8   :  { %v1487_v1 = vadd.f32 %v1486_v60, %v1360_v0 }
 0x2da   :  { %1847 = vset.pattern.permute.xlu1 %v2303_v50  ;;  %1846 = vset.pattern.permute.xlu2 %v2312_v52  ;;  %v1488_v8 = vadd.f32 %v1487_v1, %v1361_v5  ;;  %v1247_v1 = vld [vmem:[#allocation6 + $0x88] sm:$0xff] }
 0x2db   :  { %1855 = vset.pattern.permute.xlu0 %v2267_v41 }
 0x2dc   :  { %v1489_v14 = vadd.f32 %v1488_v8, %v1362_v10  ;;  %v544_v39 = vpop.permute.xlu2 %543 }
 0x2dd   :  { %v1372_v11 = vmul.f32 %v1244_v4, %v544_v39 }
 0x2e2   :  { %640 = vperm.xlu1 %1847, %v2318_v53   ;;  %634 = vperm.xlu2 %1846, %v2318_v53  }
 0x2e3   :  { %689 = vperm.xlu0 %1855, %v2344_v61  }
 0x2e4   :  { %v532_v29 = vpop.permute.xlu1 %531 }
 0x2e5   :  { %v490_v13 = vpop.permute.xlu0 %489  ;;  %v1370_v58 = vmul.f32 %v1242_v55, %v532_v29  ;;  %v1254_v55 = vld [vmem:[#allocation6 + $0xc0] sm:$0xff] }
 0x2e6   :  { %v1363_v15 = vmul.f32 %v1235_v9, %v490_v13  ;;  %v1245_v9 = vld [vmem:[#allocation6 + $0x78] sm:$0xff] }
 0x2e8   :  { %v1490_v18 = vadd.f32 %v1489_v14, %v1363_v15 }
 0x2ea   :  { %v1491_v21 = vadd.f32 %v1490_v18, %v1364_v17  ;;  %1849 = vset.pattern.permute.xlu1 %v2249_v24  ;;  %1848 = vset.pattern.permute.xlu2 %v2300_v49  ;;  %v1248_v17 = vld [vmem:[#allocation6 + $0x90] sm:$0xff]  ;;  %v1249_v18 = vld [vmem:[#allocation6 + $0x98] sm:$0xff] }
 0x2eb   :  { %1860 = vset.pattern.permute.xlu0 %v2291_v47 }
 0x2ec   :  { %v1492_v23 = vadd.f32 %v1491_v21, %v1365_v20  ;;  %v557_v0 = vpop.permute.xlu2 %556  ;;  %v1250_v21 = vld [vmem:[#allocation6 + $0xa0] sm:$0xff] }
 0x2ed   :  { %v1374_v5 = vmul.f32 %v1246_v63, %v557_v0  ;;  %v1255_v63 = vld [vmem:[#allocation6 + $0xc8] sm:$0xff]  ;;  %v1256_v0 = vld [vmem:[#allocation6 + $0xd0] sm:$0xff] }
 0x2f2   :  { %653 = vperm.xlu1 %1849, %v2344_v61   ;;  %646 = vperm.xlu2 %1848, %v2318_v53   ;;  %v1369_v53 = vmul.f32 %v1241_v36, %v526_v27 }
 0x2f3   :  { %719 = vperm.xlu0 %1860, %v2344_v61  }
 0x2f4   :  { %v550_v56 = vpop.permute.xlu1 %549 }
 0x2f5   :  { %v508_v31 = vpop.permute.xlu0 %507  ;;  %v1373_v13 = vmul.f32 %v1245_v9, %v550_v56  ;;  %v1258_v9 = vld [vmem:[#allocation6 + $0xe0] sm:$0xff] }
 0x2f6   :  { %v1366_v32 = vmul.f32 %v1238_v28, %v508_v31  ;;  %v1251_v28 = vld [vmem:[#allocation6 + $0xa8] sm:$0xff] }
 0x2f8   :  { %v1493_v35 = vadd.f32 %v1492_v23, %v1366_v32 }
 0x2fa   :  { %v1494_v54 = vadd.f32 %v1493_v35, %v1367_v34  ;;  %1852 = vset.pattern.permute.xlu1 %v2256_v26  ;;  %1851 = vset.pattern.permute.xlu2 %v2282_v45  ;;  %v1252_v35 = vld [vmem:[#allocation6 + $0xb0] sm:$0xff] }
 0x2fb   :  { %1865 = vset.pattern.permute.xlu0 %v2249_v24 }
 0x2fc   :  { %v1495_v57 = vadd.f32 %v1494_v54, %v1368_v37  ;;  %v575_v16 = vpop.permute.xlu2 %574  ;;  %v1253_v37 = vld [vmem:[#allocation6 + $0xb8] sm:$0xff] }
 0x2fd   :  { %v1377_v23 = vmul.f32 %v1249_v18, %v575_v16 }
 0x2fe   :  { %v1496_v59 = vadd.f32 %v1495_v57, %v1369_v53 }
 0x300   :  { %v1497_v60 = vadd.f32 %v1496_v59, %v1370_v58 }
 0x302   :  { %671 = vperm.xlu1 %1852, %v2344_v61   ;;  %665 = vperm.xlu2 %1851, %v2344_v61  }
 0x303   :  { %750 = vperm.xlu0 %1865, %v2365_v62  }
 0x304   :  { %v563_v3 = vpop.permute.xlu1 %562 }
 0x305   :  { %v1375_v6 = vmul.f32 %v1247_v1, %v563_v3  ;;  %v538_v7 = vpop.permute.xlu0 %537 }
 0x306   :  { %v1371_v8 = vmul.f32 %v1243_v2, %v538_v7  ;;  %v2394_v7 = vperm.slane %v2260_v38, 4 }
 0x307   :  { %v1507_v10 = vadd.f32 %v1375_v6, %v1374_v5 }
 0x308   :  { %v1498_v12 = vadd.f32 %v1497_v60, %v1371_v8  ;;  %v1257_v8 = vld [vmem:[#allocation6 + $0xd8] sm:$0xff] }
 0x30a   :  { %v1499_v14 = vadd.f32 %v1498_v12, %v1372_v11  ;;  %1854 = vset.pattern.permute.xlu1 %v2294_v48  ;;  %1853 = vset.pattern.permute.xlu2 %v2252_v25 }
 0x30b   :  { %1870 = vset.pattern.permute.xlu0 %v2294_v48 }
 0x30c   :  { %v2373_v15 = vadd.f32 %v1499_v14, %v1373_v13  ;;  %v587_v29 = vpop.permute.xlu2 %586  ;;  %v1259_v13 = vld [vmem:[#allocation6 + $0xe8] sm:$0xff] }
 0x30d   :  { %v1379_v32 = vmul.f32 %v1251_v28, %v587_v29 }
 0x312   :  { %683 = vperm.xlu1 %1854, %v2344_v61   ;;  %677 = vperm.xlu2 %1853, %v2344_v61  }
 0x313   :  { %780 = vperm.xlu0 %1870, %v2365_v62  }
 0x314   :  { %v581_v22 = vpop.permute.xlu1 %580 }
 0x315   :  { %v569_v19 = vpop.permute.xlu0 %568  ;;  %v1378_v30 = vmul.f32 %v1250_v21, %v581_v22  ;;  %v1501_v21 = vrot.slane %v2373_v15, 4  ;;  %v1260_v22 = vld [vmem:[#allocation6 + $0xf0] sm:$0xff] }
 0x316   :  { %v1376_v20 = vmul.f32 %v1248_v17, %v569_v19 }
 0x317   :  { %v1502_v29 = vadd.f32 %v1501_v21, %v2373_v15  ;;  %v1262_v15 = vld [vmem:[#allocation6 + $0x100] sm:$0xff] }
 0x318   :  { %v1508_v27 = vadd.f32 %v1507_v10, %v1376_v20 }
 0x31a   :  { %v1509_v31 = vadd.f32 %v1508_v27, %v1377_v23  ;;  %1857 = vset.pattern.permute.xlu1 %v2306_v51  ;;  %1856 = vset.pattern.permute.xlu2 %v2264_v40  ;;  %v1261_v23 = vld [vmem:[#allocation6 + $0xf8] sm:$0xff] }
 0x31b   :  { %1875 = vset.pattern.permute.xlu0 %v2276_v43 }
 0x31c   :  { %v1510_v33 = vadd.f32 %v1509_v31, %v1378_v30  ;;  %v605_v53 = vpop.permute.xlu2 %604 }
 0x31d   :  { %v1382_v58 = vmul.f32 %v1254_v55, %v605_v53  ;;  %v1263_v55 = vld [vmem:[#allocation6 + $0x108] sm:$0xff] }
 0x31e   :  { %v1511_v34 = vadd.f32 %v1510_v33, %v1379_v32  ;;  %v1503_v33 = vrot.slane %v1502_v29, 2 }
 0x322   :  { %701 = vperm.xlu1 %1857, %v2344_v61   ;;  %695 = vperm.xlu2 %1856, %v2344_v61  }
 0x323   :  { %810 = vperm.xlu0 %1875, %v2365_v62  }
 0x324   :  { %v593_v36 = vpop.permute.xlu1 %592 }
 0x325   :  { %v1380_v39 = vmul.f32 %v1252_v35, %v593_v36  ;;  %v599_v54 = vpop.permute.xlu0 %598 }
 0x326   :  { %v1381_v57 = vmul.f32 %v1253_v37, %v599_v54 }
 0x327   :  { %v1512_v56 = vadd.f32 %v1511_v34, %v1380_v39 }
 0x329   :  { %v1513_v59 = vadd.f32 %v1512_v56, %v1381_v57  ;;  %v1264_v57 = vld [vmem:[#allocation6 + $0x110] sm:$0xff] }
 0x32a   :  { %1859 = vset.pattern.permute.xlu1 %v2276_v43  ;;  %1858 = vset.pattern.permute.xlu2 %v2279_v44 }
 0x32b   :  { %1880 = vset.pattern.permute.xlu0 %v2300_v49  ;;  %v1514_v60 = vadd.f32 %v1513_v59, %v1382_v58 }
 0x32c   :  { %v617_v1 = vpop.permute.xlu2 %616 }
 0x32d   :  { %v1384_v4 = vmul.f32 %v1256_v0, %v617_v1 }
 0x332   :  { %713 = vperm.xlu1 %1859, %v2344_v61   ;;  %707 = vperm.xlu2 %1858, %v2344_v61  }
 0x333   :  { %840 = vperm.xlu0 %1880, %v2365_v62  }
 0x334   :  { %v611_v2 = vpop.permute.xlu1 %610 }
 0x335   :  { %v1383_v3 = vmul.f32 %v1255_v63, %v611_v2  ;;  %v629_v10 = vpop.permute.xlu0 %628 }
 0x336   :  { %v1386_v16 = vmul.f32 %v1258_v9, %v629_v10  ;;  %v1266_v9 = vld [vmem:[#allocation6 + $0x120] sm:$0xff] }
 0x337   :  { %v1515_v5 = vadd.f32 %v1514_v60, %v1383_v3 }
 0x339   :  { %v1516_v6 = vadd.f32 %v1515_v5, %v1384_v4 }
 0x33a   :  { %1862 = vset.pattern.permute.xlu1 %v2312_v52  ;;  %1861 = vset.pattern.permute.xlu2 %v2288_v46 }
 0x33b   :  { %1885 = vset.pattern.permute.xlu0 %v2252_v25 }
 0x33c   :  { %v635_v14 = vpop.permute.xlu2 %634 }
 0x33d   :  { %v1387_v18 = vmul.f32 %v1259_v13, %v635_v14 }
 0x342   :  { %731 = vperm.xlu1 %1862, %v2344_v61   ;;  %725 = vperm.xlu2 %1861, %v2344_v61  }
 0x343   :  { %871 = vperm.xlu0 %1885, %v2394_v7  }
 0x344   :  { %v623_v11 = vpop.permute.xlu1 %622 }
 0x345   :  { %v1385_v12 = vmul.f32 %v1257_v8, %v623_v11  ;;  %v660_v53 = vpop.permute.xlu0 %659  ;;  %v1265_v8 = vld [vmem:[#allocation6 + $0x118] sm:$0xff] }
 0x346   :  { %v1391_v63 = vmul.f32 %v1263_v55, %v660_v53  ;;  %v1272_v55 = vld [vmem:[#allocation6 + $0x150] sm:$0xff]  ;;  %v1273_v53 = vld [vmem:[#allocation6 + $0x158] sm:$0xff] }
 0x347   :  { %v1517_v17 = vadd.f32 %v1516_v6, %v1385_v12  ;;  %v2420_v6 = vperm.slane %v2260_v38, 5 }
 0x349   :  { %v1518_v19 = vadd.f32 %v1517_v17, %v1386_v16  ;;  %v1267_v17 = vld [vmem:[#allocation6 + $0x128] sm:$0xff] }
 0x34a   :  { %1864 = vset.pattern.permute.xlu1 %v2300_v49  ;;  %1863 = vset.pattern.permute.xlu2 %v2303_v50 }
 0x34b   :  { %1890 = vset.pattern.permute.xlu0 %v2279_v44  ;;  %v1519_v20 = vadd.f32 %v1518_v19, %v1387_v18  ;;  %v1268_v18 = vld [vmem:[#allocation6 + $0x130] sm:$0xff] }
 0x34c   :  { %v647_v27 = vpop.permute.xlu2 %646 }
 0x34d   :  { %v1389_v31 = vmul.f32 %v1261_v23, %v647_v27 }
 0x352   :  { %743 = vperm.xlu1 %1864, %v2344_v61   ;;  %737 = vperm.xlu2 %1863, %v2344_v61   ;;  %v1504_v61 = vadd.f32 %v1503_v33, %v1502_v29  ;;  %v1270_v33 = vld [vmem:[#allocation6 + $0x140] sm:$0xff] }
 0x353   :  { %901 = vperm.xlu0 %1890, %v2394_v7  }
 0x354   :  { %v641_v28 = vpop.permute.xlu1 %640  ;;  %v1505_v39 = vrot.slane %v1504_v61, 1 }
 0x355   :  { %v1388_v30 = vmul.f32 %v1260_v22, %v641_v28  ;;  %v690_v19 = vpop.permute.xlu0 %689  ;;  %v1269_v22 = vld [vmem:[#allocation6 + $0x138] sm:$0xff] }
 0x356   :  { %v1506_v60 = vadd.f32 %v1505_v39, %v1504_v61  ;;  %v1396_v27 = vmul.f32 %v1268_v18, %v690_v19 }
 0x357   :  { %v1520_v32 = vadd.f32 %v1519_v20, %v1388_v30 }
 0x359   :  { %v1521_v34 = vadd.f32 %v1520_v32, %v1389_v31  ;;  %v2435_v32 = vperm.slane %v2260_v38, 6 }
 0x35a   :  { %1867 = vset.pattern.permute.xlu1 %v2282_v45  ;;  %1866 = vset.pattern.permute.xlu2 %v2270_v42 }
 0x35b   :  { %v1522_v35 = vrot.slane %v1521_v34, 4  ;;  %1895 = vset.pattern.permute.xlu0 %v2303_v50 }
 0x35c   :  { %v666_v58 = vpop.permute.xlu2 %665 }
 0x35d   :  { %v1523_v36 = vadd.f32 %v1522_v35, %v1521_v34  ;;  %v1392_v2 = vmul.f32 %v1264_v57, %v666_v58  ;;  %v1271_v34 = vld [vmem:[#allocation6 + $0x148] sm:$0xff]  ;;  %v1274_v58 = vld [vmem:[#allocation6 + $0x160] sm:$0xff] }
 0x35f   :  { %v1524_v37 = vrot.slane %v1523_v36, 2 }
 0x361   :  { %v1525_v54 = vadd.f32 %v1524_v37, %v1523_v36 }
 0x362   :  { %762 = vperm.xlu1 %1867, %v2365_v62   ;;  %756 = vperm.xlu2 %1866, %v2365_v62  }
 0x363   :  { %v1526_v56 = vrot.slane %v1525_v54, 1  ;;  %931 = vperm.xlu0 %1895, %v2394_v7  }
 0x364   :  { %v654_v59 = vpop.permute.xlu1 %653 }
 0x365   :  { %v1527_v0 = vadd.f32 %v1526_v56, %v1525_v54  ;;  %v1390_v1 = vmul.f32 %v1262_v15, %v654_v59  ;;  %v720_v15 = vpop.permute.xlu0 %719 }
 0x367   :  { %v1528_v3 = vadd.f32 %v1391_v63, %v1390_v1  ;;  %v2414_v4 = vsel %vm374_vm1, %v1527_v0, %v1506_v60  ;;  %v1401_v60 = vmul.f32 %v1273_v53, %v720_v15 }
 0x369   :  { %v1529_v5 = vadd.f32 %v1528_v3, %v1392_v2  ;;  %v2450_v3 = vperm.slane %v2260_v38, 7  ;;  %v1279_v38 = vld [vmem:[#allocation6 + $0x188] sm:$0xff] }
 0x36a   :  { %1869 = vset.pattern.permute.xlu1 %v2252_v25  ;;  %1868 = vset.pattern.permute.xlu2 %v2256_v26 }
 0x36b   :  { %1900 = vset.pattern.permute.xlu0 %v2256_v26 }
 0x36c   :  { %v678_v10 = vpop.permute.xlu2 %677 }
 0x36d   :  { %v1394_v13 = vmul.f32 %v1266_v9, %v678_v10 }
 0x372   :  { %774 = vperm.xlu1 %1869, %v2365_v62   ;;  %768 = vperm.xlu2 %1868, %v2365_v62  }
 0x373   :  { %962 = vperm.xlu0 %1900, %v2420_v6  }
 0x374   :  { %v672_v11 = vpop.permute.xlu1 %671 }
 0x375   :  { %v1393_v12 = vmul.f32 %v1265_v8, %v672_v11  ;;  %v1276_v8 = vld [vmem:[#allocation6 + $0x170] sm:$0xff] }
 0x377   :  { %v1530_v14 = vadd.f32 %v1529_v5, %v1393_v12  ;;  %v1275_v5 = vld [vmem:[#allocation6 + $0x168] sm:$0xff] }
 0x379   :  { %v1531_v16 = vadd.f32 %v1530_v14, %v1394_v13 }
 0x37a   :  { %1872 = vset.pattern.permute.xlu1 %v2264_v40  ;;  %1871 = vset.pattern.permute.xlu2 %v2267_v41 }
 0x37b   :  { %1905 = vset.pattern.permute.xlu0 %v2306_v51 }
 0x37c   :  { %v696_v23 = vpop.permute.xlu2 %695 }
 0x37d   :  { %v1397_v29 = vmul.f32 %v1269_v22, %v696_v23 }
 0x382   :  { %792 = vperm.xlu1 %1872, %v2365_v62   ;;  %786 = vperm.xlu2 %1871, %v2365_v62  }
 0x383   :  { %992 = vperm.xlu0 %1905, %v2420_v6  }
 0x384   :  { %v684_v20 = vpop.permute.xlu1 %683 }
 0x385   :  { %v1395_v21 = vmul.f32 %v1267_v17, %v684_v20  ;;  %v751_v17 = vpop.permute.xlu0 %750 }
 0x387   :  { %v1532_v28 = vadd.f32 %v1531_v16, %v1395_v21  ;;  %v1278_v16 = vld [vmem:[#allocation6 + $0x180] sm:$0xff]  ;;  %v1277_v21 = vld [vmem:[#allocation6 + $0x178] sm:$0xff] }
 0x388   :  { %v1406_v18 = vmul.f32 %v1278_v16, %v751_v17 }
 0x389   :  { %v1533_v30 = vadd.f32 %v1532_v28, %v1396_v27 }
 0x38a   :  { %1874 = vset.pattern.permute.xlu1 %v2279_v44  ;;  %1873 = vset.pattern.permute.xlu2 %v2306_v51 }
 0x38b   :  { %1910 = vset.pattern.permute.xlu0 %v2270_v42  ;;  %v1534_v31 = vadd.f32 %v1533_v30, %v1397_v29 }
 0x38c   :  { %v708_v35 = vpop.permute.xlu2 %707 }
 0x38d   :  { %v1399_v37 = vmul.f32 %v1271_v34, %v708_v35  ;;  %v1280_v34 = vld [vmem:[#allocation6 + $0x190] sm:$0xff] }
 0x392   :  { %804 = vperm.xlu1 %1874, %v2365_v62   ;;  %798 = vperm.xlu2 %1873, %v2365_v62  }
 0x393   :  { %1047 = vperm.xlu0 %1910, %v2435_v32  }
 0x394   :  { %v702_v61 = vpop.permute.xlu1 %701 }
 0x395   :  { %v1398_v36 = vmul.f32 %v1270_v33, %v702_v61  ;;  %v1281_v61 = vld [vmem:[#allocation6 + $0x198] sm:$0xff] }
 0x397   :  { %v1535_v39 = vadd.f32 %v1534_v31, %v1398_v36 }
 0x399   :  { %v1536_v54 = vadd.f32 %v1535_v39, %v1399_v37 }
 0x39a   :  { %1877 = vset.pattern.permute.xlu1 %v2288_v46  ;;  %1876 = vset.pattern.permute.xlu2 %v2291_v47 }
 0x39b   :  { %1915 = vset.pattern.permute.xlu0 %v2256_v26 }
 0x39c   :  { %v726_v59 = vpop.permute.xlu2 %725 }
 0x39d   :  { %v1402_v0 = vmul.f32 %v1274_v58, %v726_v59  ;;  %v781_v58 = vpop.permute.xlu0 %780 }
 0x3a2   :  { %822 = vperm.xlu1 %1877, %v2365_v62   ;;  %816 = vperm.xlu2 %1876, %v2365_v62  }
 0x3a3   :  { %1059 = vperm.xlu0 %1915, %v2435_v32  }
 0x3a4   :  { %v714_v56 = vpop.permute.xlu1 %713 }
 0x3a5   :  { %v1400_v57 = vmul.f32 %v1272_v55, %v714_v56  ;;  %v1282_v56 = vld [vmem:[#allocation6 + $0x1a0] sm:$0xff] }
 0x3a7   :  { %v1537_v63 = vadd.f32 %v1536_v54, %v1400_v57  ;;  %v1283_v57 = vld [vmem:[#allocation6 + $0x1a8] sm:$0xff] }
 0x3a9   :  { %v1538_v1 = vadd.f32 %v1537_v63, %v1401_v60  ;;  %v1284_v60 = vld [vmem:[#allocation6 + $0x1b0] sm:$0xff] }
 0x3aa   :  { %1879 = vset.pattern.permute.xlu1 %v2303_v50  ;;  %1878 = vset.pattern.permute.xlu2 %v2312_v52 }
 0x3ab   :  { %1920 = vset.pattern.permute.xlu0 %v2294_v48  ;;  %v1539_v2 = vadd.f32 %v1538_v1, %v1402_v0  ;;  %v1411_v0 = vmul.f32 %v1283_v57, %v781_v58 }
 0x3ac   :  { %v738_v9 = vpop.permute.xlu2 %737 }
 0x3ad   :  { %v1404_v12 = vmul.f32 %v1276_v8, %v738_v9  ;;  %v1285_v9 = vld [vmem:[#allocation6 + $0x1b8] sm:$0xff] }
 0x3b2   :  { %834 = vperm.xlu1 %1879, %v2365_v62   ;;  %828 = vperm.xlu2 %1878, %v2365_v62  }
 0x3b3   :  { %1168 = vperm.xlu0 %1920, %v2450_v3  }
 0x3b4   :  { %v732_v10 = vpop.permute.xlu1 %731 }
 0x3b5   :  { %v1403_v11 = vmul.f32 %v1275_v5, %v732_v10  ;;  %v1286_v10 = vld [vmem:[#allocation6 + $0x1c0] sm:$0xff] }
 0x3b7   :  { %v1540_v13 = vadd.f32 %v1539_v2, %v1403_v11 }
 0x3b9   :  { %v1541_v14 = vadd.f32 %v1540_v13, %v1404_v12 }
 0x3ba   :  { %1882 = vset.pattern.permute.xlu1 %v2270_v42  ;;  %1881 = vset.pattern.permute.xlu2 %v2249_v24 }
 0x3bb   :  { %1925 = vset.pattern.permute.xlu0 %v2306_v51 }
 0x3bc   :  { %v757_v62 = vpop.permute.xlu2 %756 }
 0x3bd   :  { %v1407_v19 = vmul.f32 %v1279_v38, %v757_v62  ;;  %v1287_v38 = vld [vmem:[#allocation6 + $0x1c8] sm:$0xff]  ;;  %v1288_v62 = vld [vmem:[#allocation6 + $0x1d0] sm:$0xff] }
 0x3bf   :  { %v1549_v20 = vadd.f32 %v1407_v19, %v1406_v18  ;;  %v811_v18 = vpop.permute.xlu0 %810 }
 0x3c2   :  { %853 = vperm.xlu1 %1882, %v2394_v7   ;;  %847 = vperm.xlu2 %1881, %v2394_v7  }
 0x3c3   :  { %1089 = vperm.xlu0 %1925, %v2435_v32  }
 0x3c4   :  { %v744_v22 = vpop.permute.xlu1 %743 }
 0x3c5   :  { %v1405_v23 = vmul.f32 %v1277_v21, %v744_v22  ;;  %v1289_v21 = vld [vmem:[#allocation6 + $0x1d8] sm:$0xff] }
 0x3c7   :  { %v1542_v27 = vadd.f32 %v1541_v14, %v1405_v23  ;;  %v1416_v23 = vmul.f32 %v1288_v62, %v811_v18  ;;  %v1297_v18 = vld [vmem:[#allocation6 + $0x218] sm:$0xff] }
 0x3c9   :  { %v1543_v28 = vrot.slane %v1542_v27, 4 }
 0x3ca   :  { %1884 = vset.pattern.permute.xlu1 %v2256_v26  ;;  %1883 = vset.pattern.permute.xlu2 %v2282_v45 }
 0x3cb   :  { %v1544_v29 = vadd.f32 %v1543_v28, %v1542_v27  ;;  %1930 = vset.pattern.permute.xlu0 %v2276_v43 }
 0x3cc   :  { %v769_v36 = vpop.permute.xlu2 %768 }
 0x3cd   :  { %v1545_v30 = vrot.slane %v1544_v29, 2  ;;  %v1409_v55 = vmul.f32 %v1281_v61, %v769_v36 }
 0x3cf   :  { %v1546_v31 = vadd.f32 %v1545_v30, %v1544_v29 }
 0x3d1   :  { %v1547_v33 = vrot.slane %v1546_v31, 1 }
 0x3d2   :  { %865 = vperm.xlu1 %1884, %v2394_v7   ;;  %859 = vperm.xlu2 %1883, %v2394_v7  }
 0x3d3   :  { %v1548_v35 = vadd.f32 %v1547_v33, %v1546_v31  ;;  %1198 = vperm.xlu0 %1930, %v2450_v3   ;;  %v1290_v31 = vld [vmem:[#allocation6 + $0x1e0] sm:$0xff]  ;;  %v1291_v33 = vld [vmem:[#allocation6 + $0x1e8] sm:$0xff] }
 0x3d4   :  { %v763_v37 = vpop.permute.xlu1 %762 }
 0x3d5   :  { %v1408_v39 = vmul.f32 %v1280_v34, %v763_v37  ;;  %v2469_v54 = vsel %vm376_vm2, %v1548_v35, %v2414_v4 }
 0x3d7   :  { %v1550_v53 = vadd.f32 %v1549_v20, %v1408_v39 }
 0x3d9   :  { %v1551_v15 = vadd.f32 %v1550_v53, %v1409_v55  ;;  %v1292_v55 = vld [vmem:[#allocation6 + $0x1f0] sm:$0xff]  ;;  %v1293_v53 = vld [vmem:[#allocation6 + $0x1f8] sm:$0xff] }
 0x3da   :  { %1887 = vset.pattern.permute.xlu1 %v2267_v41  ;;  %1886 = vset.pattern.permute.xlu2 %v2294_v48 }
 0x3db   :  { %1933 = vset.pattern.permute.xlu0 %v2312_v52 }
 0x3dc   :  { %v787_v63 = vpop.permute.xlu2 %786 }
 0x3dd   :  { %v1412_v2 = vmul.f32 %v1284_v60, %v787_v63 }
 0x3e2   :  { %883 = vperm.xlu1 %1887, %v2394_v7   ;;  %877 = vperm.xlu2 %1886, %v2394_v7  }
 0x3e3   :  { %1022 = vperm.xlu0 %1933, %v2420_v6  }
 0x3e4   :  { %v775_v4 = vpop.permute.xlu1 %774 }
 0x3e5   :  { %v1410_v59 = vmul.f32 %v1282_v56, %v775_v4 }
 0x3e7   :  { %v1552_v1 = vadd.f32 %v1551_v15, %v1410_v59  ;;  %v841_v15 = vpop.permute.xlu0 %840 }
 0x3e8   :  { %v1421_v58 = vmul.f32 %v1293_v53, %v841_v15  ;;  %v1302_v53 = vld [vmem:[#allocation6 + $0x240] sm:$0xff]  ;;  %v1303_v15 = vld [vmem:[#allocation6 + $0x248] sm:$0xff] }
 0x3e9   :  { %v1553_v5 = vadd.f32 %v1552_v1, %v1411_v0 }
 0x3ea   :  { %1889 = vset.pattern.permute.xlu1 %v2306_v51  ;;  %1888 = vset.pattern.permute.xlu2 %v2264_v40 }
 0x3eb   :  { %1937 = vset.pattern.permute.xlu0 %v2303_v50  ;;  %v1554_v8 = vadd.f32 %v1553_v5, %v1412_v2  ;;  %v1294_v5 = vld [vmem:[#allocation6 + $0x200] sm:$0xff] }
 0x3ec   :  { %v799_v11 = vpop.permute.xlu2 %798 }
 0x3ed   :  { %v1414_v14 = vmul.f32 %v1286_v10, %v799_v11 }
 0x3f2   :  { %895 = vperm.xlu1 %1889, %v2394_v7   ;;  %889 = vperm.xlu2 %1888, %v2394_v7  }
 0x3f3   :  { %1125 = vperm.xlu0 %1937, %v2435_v32  }
 0x3f4   :  { %v793_v12 = vpop.permute.xlu1 %792 }
 0x3f5   :  { %v1413_v13 = vmul.f32 %v1285_v9, %v793_v12  ;;  %v1296_v9 = vld [vmem:[#allocation6 + $0x210] sm:$0xff] }
 0x3f7   :  { %v1555_v16 = vadd.f32 %v1554_v8, %v1413_v13 }
 0x3f9   :  { %v1556_v17 = vadd.f32 %v1555_v16, %v1414_v14 }
 0x3fa   :  { %1892 = vset.pattern.permute.xlu1 %v2291_v47  ;;  %1891 = vset.pattern.permute.xlu2 %v2276_v43 }
 0x3fb   :  { %1941 = vset.pattern.permute.xlu0 %v2300_v49 }
 0x3fc   :  { %v817_v22 = vpop.permute.xlu2 %816 }
 0x3fd   :  { %v1417_v28 = vmul.f32 %v1289_v21, %v817_v22 }
 0x402   :  { %913 = vperm.xlu1 %1892, %v2394_v7   ;;  %907 = vperm.xlu2 %1891, %v2394_v7  }
 0x404   :  { %v805_v19 = vpop.permute.xlu1 %804 }
 0x405   :  { %v1415_v20 = vmul.f32 %v1287_v38, %v805_v19  ;;  %v1298_v19 = vld [vmem:[#allocation6 + $0x220] sm:$0xff] }
 0x407   :  { %v1557_v27 = vadd.f32 %v1556_v17, %v1415_v20  ;;  %v872_v20 = vpop.permute.xlu0 %871 }
 0x409   :  { %v1558_v29 = vadd.f32 %v1557_v27, %v1416_v23  ;;  %v1299_v23 = vld [vmem:[#allocation6 + $0x228] sm:$0xff] }
 0x40a   :  { %1894 = vset.pattern.permute.xlu1 %v2312_v52  ;;  %1893 = vset.pattern.permute.xlu2 %v2288_v46 }
 0x40b   :  { %v1559_v30 = vadd.f32 %v1558_v29, %v1417_v28  ;;  %v1426_v28 = vmul.f32 %v1298_v19, %v872_v20  ;;  %v1309_v19 = vld [vmem:[#allocation6 + $0x278] sm:$0xff] }
 0x40c   :  { %v829_v34 = vpop.permute.xlu2 %828 }
 0x40d   :  { %v1419_v36 = vmul.f32 %v1291_v33, %v829_v34  ;;  %v1300_v33 = vld [vmem:[#allocation6 + $0x230] sm:$0xff]  ;;  %v1301_v34 = vld [vmem:[#allocation6 + $0x238] sm:$0xff] }
 0x412   :  { %925 = vperm.xlu1 %1894, %v2394_v7   ;;  %919 = vperm.xlu2 %1893, %v2394_v7  }
 0x414   :  { %v823_v35 = vpop.permute.xlu1 %822 }
 0x415   :  { %v1418_v61 = vmul.f32 %v1290_v31, %v823_v35 }
 0x417   :  { %v1560_v37 = vadd.f32 %v1559_v30, %v1418_v61 }
 0x419   :  { %v1561_v39 = vadd.f32 %v1560_v37, %v1419_v36 }
 0x41a   :  { %1897 = vset.pattern.permute.xlu1 %v2249_v24  ;;  %1896 = vset.pattern.permute.xlu2 %v2300_v49 }
 0x41c   :  { %v848_v63 = vpop.permute.xlu2 %847 }
 0x41d   :  { %v1422_v12 = vmul.f32 %v1294_v5, %v848_v63  ;;  %v1305_v5 = vld [vmem:[#allocation6 + $0x258] sm:$0xff] }
 0x422   :  { %944 = vperm.xlu1 %1897, %v2420_v6   ;;  %937 = vperm.xlu2 %1896, %v2394_v7   ;;  %v1295_v7 = vld [vmem:[#allocation6 + $0x208] sm:$0xff] }
 0x424   :  { %v835_v56 = vpop.permute.xlu1 %834 }
 0x425   :  { %v1420_v57 = vmul.f32 %v1292_v55, %v835_v56  ;;  %v902_v56 = vpop.permute.xlu0 %901 }
 0x427   :  { %v1562_v4 = vadd.f32 %v1561_v39, %v1420_v57 }
 0x429   :  { %v1563_v59 = vadd.f32 %v1562_v4, %v1421_v58  ;;  %v1304_v4 = vld [vmem:[#allocation6 + $0x250] sm:$0xff] }
 0x42a   :  { %1899 = vset.pattern.permute.xlu1 %v2282_v45  ;;  %1898 = vset.pattern.permute.xlu2 %v2270_v42 }
 0x42b   :  { %v1564_v60 = vrot.slane %v1563_v59, 4 }
 0x42c   :  { %v860_v10 = vpop.permute.xlu2 %859 }
 0x42d   :  { %v1565_v0 = vadd.f32 %v1564_v60, %v1563_v59  ;;  %v1424_v16 = vmul.f32 %v1296_v9, %v860_v10  ;;  %v1431_v60 = vmul.f32 %v1303_v15, %v902_v56 }
 0x42f   :  { %v1566_v1 = vrot.slane %v1565_v0, 2 }
 0x431   :  { %v1567_v2 = vadd.f32 %v1566_v1, %v1565_v0 }
 0x432   :  { %956 = vperm.xlu1 %1899, %v2420_v6   ;;  %950 = vperm.xlu2 %1898, %v2420_v6  }
 0x433   :  { %v1568_v8 = vrot.slane %v1567_v2, 1 }
 0x434   :  { %v854_v11 = vpop.permute.xlu1 %853 }
 0x435   :  { %v1569_v13 = vadd.f32 %v1568_v8, %v1567_v2  ;;  %v1423_v14 = vmul.f32 %v1295_v7, %v854_v11  ;;  %v1306_v7 = vld [vmem:[#allocation6 + $0x260] sm:$0xff] }
 0x437   :  { %v1570_v17 = vadd.f32 %v1423_v14, %v1422_v12  ;;  %v2502_v38 = vsel %vm378_vm3, %v1569_v13, %v2469_v54  ;;  %v1307_v14 = vld [vmem:[#allocation6 + $0x268] sm:$0xff] }
 0x439   :  { %v1571_v62 = vadd.f32 %v1570_v17, %v1424_v16  ;;  %v1308_v16 = vld [vmem:[#allocation6 + $0x270] sm:$0xff]  ;;  %v932_v17 = vpop.permute.xlu0 %931 }
 0x43a   :  { %1902 = vset.pattern.permute.xlu1 %v2294_v48  ;;  %1901 = vset.pattern.permute.xlu2 %v2252_v25 }
 0x43c   :  { %v878_v27 = vpop.permute.xlu2 %877 }
 0x43d   :  { %v1427_v54 = vmul.f32 %v1299_v23, %v878_v27 }
 0x441   :  { %v963_v15 = vpop.permute.xlu0 %962 }
 0x442   :  { %974 = vperm.xlu1 %1902, %v2420_v6   ;;  %968 = vperm.xlu2 %1901, %v2420_v6  }
 0x444   :  { %v866_v21 = vpop.permute.xlu1 %865 }
 0x445   :  { %v1425_v22 = vmul.f32 %v1297_v18, %v866_v21  ;;  %v1436_v21 = vmul.f32 %v1308_v16, %v932_v17 }
 0x447   :  { %v1572_v29 = vadd.f32 %v1571_v62, %v1425_v22 }
 0x449   :  { %v1573_v30 = vadd.f32 %v1572_v29, %v1426_v28 }
 0x44a   :  { %1904 = vset.pattern.permute.xlu1 %v2264_v40  ;;  %1903 = vset.pattern.permute.xlu2 %v2267_v41 }
 0x44b   :  { %v1574_v31 = vadd.f32 %v1573_v30, %v1427_v54  ;;  %v1311_v54 = vld [vmem:[#allocation6 + $0x288] sm:$0xff] }
 0x44c   :  { %v890_v35 = vpop.permute.xlu2 %889 }
 0x44d   :  { %v1429_v37 = vmul.f32 %v1301_v34, %v890_v35 }
 0x452   :  { %986 = vperm.xlu1 %1904, %v2420_v6   ;;  %980 = vperm.xlu2 %1903, %v2420_v6  }
 0x454   :  { %v884_v61 = vpop.permute.xlu1 %883 }
 0x455   :  { %v1428_v36 = vmul.f32 %v1300_v33, %v884_v61 }
 0x457   :  { %v1575_v39 = vadd.f32 %v1574_v31, %v1428_v36  ;;  %v1310_v31 = vld [vmem:[#allocation6 + $0x280] sm:$0xff] }
 0x459   :  { %v1576_v55 = vadd.f32 %v1575_v39, %v1429_v37 }
 0x45a   :  { %1907 = vset.pattern.permute.xlu1 %v2276_v43  ;;  %1906 = vset.pattern.permute.xlu2 %v2279_v44 }
 0x45c   :  { %v908_v59 = vpop.permute.xlu2 %907 }
 0x45d   :  { %v1432_v0 = vmul.f32 %v1304_v4, %v908_v59 }
 0x462   :  { %1004 = vperm.xlu1 %1907, %v2420_v6   ;;  %998 = vperm.xlu2 %1906, %v2420_v6  }
 0x464   :  { %v896_v57 = vpop.permute.xlu1 %895 }
 0x465   :  { %v1430_v58 = vmul.f32 %v1302_v53, %v896_v57  ;;  %v1313_v53 = vld [vmem:[#allocation6 + $0x298] sm:$0xff] }
 0x466   :  { %v1441_v59 = vmul.f32 %v1313_v53, %v963_v15 }
 0x467   :  { %v1577_v63 = vadd.f32 %v1576_v55, %v1430_v58  ;;  %v1312_v55 = vld [vmem:[#allocation6 + $0x290] sm:$0xff]  ;;  %v1314_v58 = vld [vmem:[#allocation6 + $0x2a0] sm:$0xff] }
 0x469   :  { %v1578_v1 = vadd.f32 %v1577_v63, %v1431_v60 }
 0x46a   :  { %1909 = vset.pattern.permute.xlu1 %v2249_v24  ;;  %1908 = vset.pattern.permute.xlu2 %v2291_v47 }
 0x46b   :  { %v1579_v2 = vadd.f32 %v1578_v1, %v1432_v0  ;;  %v1315_v0 = vld [vmem:[#allocation6 + $0x2a8] sm:$0xff]  ;;  %v1316_v1 = vld [vmem:[#allocation6 + $0x2b0] sm:$0xff] }
 0x46c   :  { %v920_v8 = vpop.permute.xlu2 %919 }
 0x46d   :  { %v1434_v11 = vmul.f32 %v1306_v7, %v920_v8 }
 0x472   :  { %1041 = vperm.xlu1 %1909, %v2435_v32   ;;  %1010 = vperm.xlu2 %1908, %v2420_v6  }
 0x474   :  { %v914_v9 = vpop.permute.xlu1 %913 }
 0x475   :  { %v1433_v10 = vmul.f32 %v1305_v5, %v914_v9 }
 0x477   :  { %v1580_v12 = vadd.f32 %v1579_v2, %v1433_v10 }
 0x479   :  { %v1581_v13 = vadd.f32 %v1580_v12, %v1434_v11  ;;  %v993_v11 = vpop.permute.xlu0 %992 }
 0x47a   :  { %1912 = vset.pattern.permute.xlu1 %v2270_v42  ;;  %1911 = vset.pattern.permute.xlu2 %v2249_v24 }
 0x47c   :  { %v938_v20 = vpop.permute.xlu2 %937 }
 0x47d   :  { %v1437_v23 = vmul.f32 %v1309_v19, %v938_v20  ;;  %v1320_v20 = vld [vmem:[#allocation6 + $0x2d0] sm:$0xff] }
 0x482   :  { %1144 = vperm.xlu1 %1912, %v2450_v3   ;;  %1138 = vperm.xlu2 %1911, %v2450_v3  }
 0x484   :  { %v926_v62 = vpop.permute.xlu1 %925 }
 0x485   :  { %v1435_v18 = vmul.f32 %v1307_v14, %v926_v62  ;;  %v1319_v14 = vld [vmem:[#allocation6 + $0x2c8] sm:$0xff] }
 0x487   :  { %v1582_v22 = vadd.f32 %v1581_v13, %v1435_v18 }
 0x489   :  { %v1583_v27 = vadd.f32 %v1582_v22, %v1436_v21  ;;  %v1321_v21 = vld [vmem:[#allocation6 + $0x2d8] sm:$0xff] }
 0x48a   :  { %1914 = vset.pattern.permute.xlu1 %v2282_v45  ;;  %1913 = vset.pattern.permute.xlu2 %v2282_v45 }
 0x48b   :  { %v1584_v24 = vadd.f32 %v1583_v27, %v1437_v23 }
 0x48c   :  { %v951_v30 = vpop.permute.xlu2 %950 }
 0x48d   :  { %v1585_v42 = vrot.slane %v1584_v24, 4  ;;  %v1439_v61 = vmul.f32 %v1311_v54, %v951_v30  ;;  %v1327_v30 = vld [vmem:[#allocation6 + $0x308] sm:$0xff] }
 0x48f   :  { %v1586_v28 = vadd.f32 %v1585_v42, %v1584_v24 }
 0x491   :  { %v1587_v29 = vrot.slane %v1586_v28, 2 }
 0x492   :  { %1150 = vperm.xlu1 %1914, %v2450_v3   ;;  %1053 = vperm.xlu2 %1913, %v2435_v32  }
 0x493   :  { %v1588_v33 = vadd.f32 %v1587_v29, %v1586_v28  ;;  %v1326_v29 = vld [vmem:[#allocation6 + $0x300] sm:$0xff] }
 0x494   :  { %v945_v34 = vpop.permute.xlu1 %944 }
 0x495   :  { %v1589_v35 = vrot.slane %v1588_v33, 1  ;;  %v1438_v36 = vmul.f32 %v1310_v31, %v945_v34  ;;  %v1048_v31 = vpop.permute.xlu0 %1047  ;;  %v1328_v34 = vld [vmem:[#allocation6 + $0x310] sm:$0xff] }
 0x497   :  { %v1591_v37 = vadd.f32 %v1439_v61, %v1438_v36  ;;  %v1590_v39 = vadd.f32 %v1589_v35, %v1588_v33  ;;  %v1455_v35 = vmul.f32 %v1327_v30, %v1048_v31 }
 0x499   :  { %v2530_v45 = vsel %vm380_vm4, %v1590_v39, %v2502_v38  ;;  %v1342_v39 = vld [vmem:[#allocation6 + $0x380] sm:$0xff] }
 0x49a   :  { %1917 = vset.pattern.permute.xlu1 %v2252_v25  ;;  %1916 = vset.pattern.permute.xlu2 %v2256_v26 }
 0x49c   :  { %v969_v4 = vpop.permute.xlu2 %968 }
 0x49d   :  { %v1442_v63 = vmul.f32 %v1314_v58, %v969_v4 }
 0x4a2   :  { %1065 = vperm.xlu1 %1917, %v2435_v32   ;;  %1156 = vperm.xlu2 %1916, %v2450_v3  }
 0x4a4   :  { %v957_v56 = vpop.permute.xlu1 %956 }
 0x4a5   :  { %v1440_v57 = vmul.f32 %v1312_v55, %v957_v56  ;;  %v1343_v55 = vld [vmem:[#allocation6 + $0x388] sm:$0xff] }
 0x4a7   :  { %v1592_v60 = vadd.f32 %v1591_v37, %v1440_v57 }
 0x4a9   :  { %v1593_v38 = vadd.f32 %v1592_v60, %v1441_v59 }
 0x4aa   :  { %1919 = vset.pattern.permute.xlu1 %v2294_v48  ;;  %1918 = vset.pattern.permute.xlu2 %v2252_v25  ;;  %v1317_v25 = vld [vmem:[#allocation6 + $0x2b8] sm:$0xff]  ;;  %v1318_v48 = vld [vmem:[#allocation6 + $0x2c0] sm:$0xff] }
 0x4ab   :  { %v1594_v26 = vadd.f32 %v1593_v38, %v1442_v63  ;;  %v1446_v17 = vmul.f32 %v1318_v48, %v993_v11  ;;  %v1669_v48 = vld [vmem:[#allocation10 + $0x78] sm:$0xff] }
 0x4ac   :  { %v981_v2 = vpop.permute.xlu2 %980  ;;  %1690 = vmatpush.xpose.msra.mxu1 %v1669_v48 }
 0x4ad   :  { %v1444_v8 = vmul.f32 %v1316_v1, %v981_v2 }
 0x4b2   :  { %1071 = vperm.xlu1 %1919, %v2435_v32   ;;  %1162 = vperm.xlu2 %1918, %v2450_v3  }
 0x4b4   :  { %v975_v5 = vpop.permute.xlu1 %974 }
 0x4b5   :  { %v1443_v7 = vmul.f32 %v1315_v0, %v975_v5  ;;  %v1060_v0 = vpop.permute.xlu0 %1059 }
 0x4b7   :  { %v1595_v9 = vadd.f32 %v1594_v26, %v1443_v7  ;;  %v1329_v26 = vld [vmem:[#allocation6 + $0x318] sm:$0xff] }
 0x4b8   :  { %v1457_v1 = vmul.f32 %v1329_v26, %v1060_v0  ;;  %v1337_v26 = vld [vmem:[#allocation6 + $0x358] sm:$0xff]  ;;  %v1338_v0 = vld [vmem:[#allocation6 + $0x360] sm:$0xff] }
 0x4b9   :  { %v1596_v10 = vadd.f32 %v1595_v9, %v1444_v8 }
 0x4ba   :  { %1922 = vset.pattern.permute.xlu1 %v2267_v41  ;;  %1921 = vset.pattern.permute.xlu2 %v2267_v41 }
 0x4bc   :  { %v999_v16 = vpop.permute.xlu2 %998 }
 0x4bd   :  { %v1447_v18 = vmul.f32 %v1319_v14, %v999_v16  ;;  %v2590_v14 = vpop.permute.xlu0 %1168  ;;  %v1665_v16 = vld [vmem:[#allocation10 + $0x58] sm:$0xff] }
 0x4c2   :  { %1174 = vperm.xlu1 %1922, %v2450_v3   ;;  %1077 = vperm.xlu2 %1921, %v2435_v32  }
 0x4c4   :  { %v987_v12 = vpop.permute.xlu1 %986 }
 0x4c5   :  { %v1445_v13 = vmul.f32 %v1317_v25, %v987_v12 }
 0x4c7   :  { %v1597_v62 = vadd.f32 %v1596_v10, %v1445_v13 }
 0x4c9   :  { %v1598_v19 = vadd.f32 %v1597_v62, %v1446_v17  ;;  %v1664_v62 = vld [vmem:[#allocation10 + $0x50] sm:$0xff] }
 0x4ca   :  { %1924 = vset.pattern.permute.xlu1 %v2264_v40  ;;  %1923 = vset.pattern.permute.xlu2 %v2264_v40 }
 0x4cb   :  { %v1599_v41 = vadd.f32 %v1598_v19, %v1447_v18  ;;  %v1331_v18 = vld [vmem:[#allocation6 + $0x328] sm:$0xff] }
 0x4cc   :  { %v1011_v22 = vpop.permute.xlu2 %1010 }
 0x4cd   :  { %v1449_v24 = vmul.f32 %v1321_v21, %v1011_v22  ;;  %v1663_v21 = vld [vmem:[#allocation10 + $0x48] sm:$0xff] }
 0x4d2   :  { %1180 = vperm.xlu1 %1924, %v2450_v3   ;;  %1083 = vperm.xlu2 %1923, %v2435_v32  }
 0x4d4   :  { %v1005_v23 = vpop.permute.xlu1 %1004 }
 0x4d5   :  { %v1448_v27 = vmul.f32 %v1320_v20, %v1005_v23  ;;  %v1332_v23 = vld [vmem:[#allocation6 + $0x330] sm:$0xff] }
 0x4d7   :  { %v1600_v42 = vadd.f32 %v1599_v41, %v1448_v27  ;;  %v1090_v41 = vpop.permute.xlu0 %1089  ;;  %v1333_v27 = vld [vmem:[#allocation6 + $0x338] sm:$0xff] }
 0x4d9   :  { %v2548_v28 = vadd.f32 %v1600_v42, %v1449_v24  ;;  %v1662_v42 = vld [vmem:[#allocation10 + $0x40] sm:$0xff] }
 0x4da   :  { %1927 = vset.pattern.permute.xlu1 %v2279_v44  ;;  %1926 = vset.pattern.permute.xlu2 %v2306_v51 }
 0x4dc   :  { %v1139_v40 = vpop.permute.xlu2 %1138 }
 0x4dd   :  { %v1470_v15 = vmul.f32 %v1342_v39, %v1139_v40 }
 0x4df   :  { %v2596_v30 = vpop.permute.xlu0 %1198 }
 0x4e2   :  { %1095 = vperm.xlu1 %1927, %v2435_v32   ;;  %1186 = vperm.xlu2 %1926, %v2450_v3  }
 0x4e4   :  { %v1042_v54 = vpop.permute.xlu1 %1041 }
 0x4e5   :  { %v1454_v33 = vmul.f32 %v1326_v29, %v1042_v54 }
 0x4e7   :  { %v1612_v36 = vadd.f32 %v1455_v35, %v1454_v33  ;;  %v1661_v33 = vld [vmem:[#allocation10 + $0x38] sm:$0xff]  ;;  %v1335_v35 = vld [vmem:[#allocation6 + $0x348] sm:$0xff] }
 0x4ea   :  { %1929 = vset.pattern.permute.xlu1 %v2276_v43  ;;  %1928 = vset.pattern.permute.xlu2 %v2279_v44  ;;  %v1344_v43 = vld [vmem:[#allocation6 + $0x390] sm:$0xff]  ;;  %v1345_v44 = vld [vmem:[#allocation6 + $0x398] sm:$0xff] }
 0x4ec   :  { %v1054_v61 = vpop.permute.xlu2 %1053 }
 0x4ed   :  { %v1456_v37 = vmul.f32 %v1328_v34, %v1054_v61  ;;  %v1334_v34 = vld [vmem:[#allocation6 + $0x340] sm:$0xff] }
 0x4ee   :  { %v1322_v61 = vld [vmem:[#allocation6 + $0x2e0] sm:$0xff] }
 0x4ef   :  { %v1613_v51 = vadd.f32 %v1612_v36, %v1456_v37  ;;  %v1660_v37 = vld [vmem:[#allocation10 + $0x30] sm:$0xff] }
 0x4f1   :  { %v1614_v7 = vadd.f32 %v1613_v51, %v1457_v1  ;;  %v1336_v51 = vld [vmem:[#allocation6 + $0x350] sm:$0xff] }
 0x4f2   :  { %1101 = vperm.xlu1 %1929, %v2435_v32   ;;  %1192 = vperm.xlu2 %1928, %v2450_v3  }
 0x4f4   :  { %v1145_v53 = vpop.permute.xlu1 %1144 }
 0x4f5   :  { %v1471_v56 = vmul.f32 %v1343_v55, %v1145_v53  ;;  %v1462_v55 = vmul.f32 %v1334_v34, %v1090_v41  ;;  %v1657_v41 = vld [vmem:[#allocation10 + $0x18] sm:$0xff] }
 0x4f6   :  { %v1349_v34 = vld [vmem:[#allocation6 + $0x3b8] sm:$0xff] }
 0x4f7   :  { %v1633_v57 = vadd.f32 %v1471_v56, %v1470_v15 }
 0x4fa   :  { %1932 = vset.pattern.permute.xlu1 %v2288_v46  ;;  %1931 = vset.pattern.permute.xlu2 %v2291_v47  ;;  %v1330_v47 = vld [vmem:[#allocation6 + $0x320] sm:$0xff] }
 0x4fc   :  { %v1157_v58 = vpop.permute.xlu2 %1156 }
 0x4fd   :  { %v1473_v60 = vmul.f32 %v1345_v44, %v1157_v58  ;;  %v1659_v44 = vld [vmem:[#allocation10 + $0x28] sm:$0xff] }
 0x4fe   :  { %v1323_v58 = vld [vmem:[#allocation6 + $0x2e8] sm:$0xff] }
 0x502   :  { %1016 = vperm.xlu1 %1932, %v2420_v6   ;;  %1107 = vperm.xlu2 %1931, %v2435_v32  }
 0x504   :  { %v1151_v4 = vpop.permute.xlu1 %1150 }
 0x505   :  { %v1472_v59 = vmul.f32 %v1344_v43, %v1151_v4  ;;  %v1023_v4 = vpop.permute.xlu0 %1022 }
 0x507   :  { %v1634_v63 = vadd.f32 %v1633_v57, %v1472_v59  ;;  %v1324_v59 = vld [vmem:[#allocation6 + $0x2f0] sm:$0xff] }
 0x509   :  { %v2562_v38 = vadd.f32 %v1634_v63, %v1473_v60 }
 0x50a   :  { %1113 = vperm.xlu1 %1932, %v2435_v32   ;;  %1204 = vperm.xlu2 %1931, %v2450_v3  }
 0x512   :  { %1935 = vset.pattern.permute.xlu1 %v2312_v52  ;;  %1934 = vset.pattern.permute.xlu2 %v2288_v46  ;;  %v2580_v46 = vpop.permute.xlu2 %1162 }
 0x514   :  { %v1066_v2 = vpop.permute.xlu1 %1065 }
 0x515   :  { %v1458_v5 = vmul.f32 %v1330_v47, %v1066_v2  ;;  %v1451_v47 = vmul.f32 %v1323_v58, %v1023_v4 }
 0x517   :  { %v1615_v8 = vadd.f32 %v1614_v7, %v1458_v5  ;;  %v1658_v5 = vld [vmem:[#allocation10 + $0x20] sm:$0xff]  ;;  %v1339_v7 = vld [vmem:[#allocation6 + $0x368] sm:$0xff] }
 0x51a   :  { %1119 = vperm.xlu1 %1935, %v2435_v32   ;;  %1210 = vperm.xlu2 %1934, %v2450_v3  }
 0x51c   :  { %v1078_v52 = vpop.permute.xlu2 %1077 }
 0x51d   :  { %v1460_v29 = vmul.f32 %v1332_v23, %v1078_v52  ;;  %v1325_v52 = vld [vmem:[#allocation6 + $0x2f8] sm:$0xff] }
 0x522   :  { %1216 = vperm.xlu1 %1935, %v2450_v3   ;;  %1936 = vset.pattern.permute.xlu2 %v2303_v50 }
 0x524   :  { %v1072_v9 = vpop.permute.xlu1 %1071 }
 0x525   :  { %v1459_v20 = vmul.f32 %v1331_v18, %v1072_v9 }
 0x527   :  { %v1616_v24 = vadd.f32 %v1615_v8, %v1459_v20  ;;  %v1340_v20 = vld [vmem:[#allocation6 + $0x370] sm:$0xff] }
 0x529   :  { %v1617_v31 = vadd.f32 %v1616_v24, %v1460_v29  ;;  %v1341_v24 = vld [vmem:[#allocation6 + $0x378] sm:$0xff] }
 0x52a   :  { %1939 = vset.pattern.permute.xlu1 %v2303_v50  ;;  %1028 = vperm.xlu2 %1936, %v2420_v6  }
 0x52c   :  { %v1084_v10 = vpop.permute.xlu2 %1083 }
 0x52d   :  { %v1461_v54 = vmul.f32 %v1333_v27, %v1084_v10  ;;  %v1348_v27 = vld [vmem:[#allocation6 + $0x3b0] sm:$0xff] }
 0x52f   :  { %v1618_v36 = vadd.f32 %v1617_v31, %v1461_v54  ;;  %v1656_v31 = vld [vmem:[#allocation10 + $0x10] sm:$0xff] }
 0x531   :  { %v1619_v57 = vadd.f32 %v1618_v36, %v1462_v55 }
 0x532   :  { %1222 = vperm.xlu1 %1939, %v2450_v3   ;;  %1938 = vset.pattern.permute.xlu2 %v2300_v49 }
 0x534   :  { %v2582_v50 = vpop.permute.xlu1 %1174 }
 0x53a   :  { %1940 = vset.pattern.permute.xlu1 %v2300_v49  ;;  %1034 = vperm.xlu2 %1938, %v2420_v6   ;;  %v1668_v49 = vld [vmem:[#allocation10 + $0x70] sm:$0xff]  ;;  %v1667_v6 = vld [vmem:[#allocation10 + $0x68] sm:$0xff] }
 0x53b   :  { %1691 = vmatpush.xpose.msra.mxu1 %v1668_v49  ;;  %v1346_v49 = vld [vmem:[#allocation6 + $0x3a0] sm:$0xff] }
 0x53c   :  { %v2584_v25 = vpop.permute.xlu2 %1186 }
 0x53f   :  { %1692 = vmatpush.xpose.msra.mxu1 %v1667_v6 }
 0x542   :  { %1228 = vperm.xlu1 %1940, %v2450_v3   ;;  %1131 = vperm.xlu2 %1938, %v2435_v32   ;;  %v1666_v32 = vld [vmem:[#allocation10 + $0x60] sm:$0xff] }
 0x543   :  { %1693 = vmatpush.xpose.msra.mxu1 %v1666_v32 }
 0x544   :  { %v2586_v11 = vpop.permute.xlu1 %1180 }
 0x547   :  { %1694 = vmatpush.xpose.msra.mxu1 %v1665_v16 }
 0x54b   :  { %1695 = vmatpush.xpose.msra.mxu1 %v1664_v62 }
 0x54c   :  { %v2588_v12 = vpop.permute.xlu2 %1192 }
 0x54f   :  { %1696 = vmatpush.xpose.msra.mxu1 %v1663_v21  ;;  %v1126_v21 = vpop.permute.xlu0 %1125 }
 0x553   :  { %1697 = vmatpush.xpose.msra.mxu1 %v1662_v42  ;;  %v1468_v42 = vmul.f32 %v1340_v20, %v1126_v21 }
 0x554   :  { %v1096_v3 = vpop.permute.xlu1 %1095 }
 0x555   :  { %v1463_v53 = vmul.f32 %v1335_v35, %v1096_v3  ;;  %v1476_v35 = vmul.f32 %v1348_v27, %v2582_v50 }
 0x557   :  { %1698 = vmatpush.xpose.msra.mxu1 %v1661_v33  ;;  %v1620_v60 = vadd.f32 %v1619_v57, %v1463_v53 }
 0x55b   :  { %1699 = vmatpush.xpose.msra.mxu1 %v1660_v37 }
 0x55c   :  { %v1108_v13 = vpop.permute.xlu2 %1107 }
 0x55d   :  { %v1465_v9 = vmul.f32 %v1337_v26, %v1108_v13 }
 0x55f   :  { %1700 = vmatpush.xpose.msra.mxu1 %v1659_v44  ;;  %v1351_v44 = vld [vmem:[#allocation6 + $0x3c8] sm:$0xff] }
 0x563   :  { %1701 = vmatpush.xpose.msra.mxu1 %v1658_v5 }
 0x564   :  { %v1102_v17 = vpop.permute.xlu1 %1101  ;;  %v2592_v19 = vpop.permute.xlu2 %1204 }
 0x565   :  { %v1464_v43 = vmul.f32 %v1336_v51, %v1102_v17  ;;  %v1474_v17 = vmul.f32 %v1346_v49, %v2580_v46 }
 0x567   :  { %v1621_v1 = vadd.f32 %v1620_v60, %v1464_v43  ;;  %1702 = vmatpush.xpose.msra.mxu1 %v1657_v41  ;;  %v1636_v29 = vadd.f32 %v2562_v38, %v1474_v17  ;;  %v1654_v43 = vld [vmem:[#allocation10] sm:$0xff]  ;;  %v1357_v17 = vld [vmem:[#allocation6 + $0x3f8] sm:$0xff] }
 0x569   :  { %v1622_v3 = vadd.f32 %v1621_v1, %v1465_v9  ;;  %v1352_v1 = vld [vmem:[#allocation6 + $0x3d0] sm:$0xff] }
 0x56b   :  { %1703 = vmatpush.xpose.msra.mxu1 %v1656_v31 }
 0x574   :  { %v1017_v22 = vpop.permute.xlu1 %1016  ;;  %v2594_v40 = vpop.permute.xlu2 %1210 }
 0x575   :  { %v1450_v15 = vmul.f32 %v1322_v61, %v1017_v22  ;;  %v1347_v22 = vld [vmem:[#allocation6 + $0x3a8] sm:$0xff] }
 0x576   :  { %v1475_v33 = vmul.f32 %v1347_v22, %v2590_v14  ;;  %v1350_v14 = vld [vmem:[#allocation6 + $0x3c0] sm:$0xff] }
 0x577   :  { %v1602_v63 = vadd.f32 %v2548_v28, %v1450_v15  ;;  %v1655_v15 = vld [vmem:[#allocation10 + $0x8] sm:$0xff]  ;;  %v1478_v60 = vmul.f32 %v1350_v14, %v2584_v25 }
 0x578   :  { %v1637_v51 = vadd.f32 %v1636_v29, %v1475_v33  ;;  %1704 = vmatpush.xpose.msra.mxu1 %v1655_v15 }
 0x579   :  { %v1603_v48 = vadd.f32 %v1602_v63, %v1451_v47  ;;  %v1479_v63 = vmul.f32 %v1351_v44, %v2588_v12 }
 0x57a   :  { %v1638_v38 = vadd.f32 %v1637_v51, %v1476_v35  ;;  %v1712_v35 = vld [vmem:[#allocation7 + $0x10] sm:$0xff]  ;;  %v1714_v51 = vld [vmem:[#allocation7 + $0x20] sm:$0xff] }
 0x57c   :  { %v1114_v39 = vpop.permute.xlu1 %1113  ;;  %1705 = vmatpush.xpose.msra.mxu1 %v1654_v43 }
 0x57d   :  { %v1466_v10 = vmul.f32 %v1338_v0, %v1114_v39  ;;  %v1477_v39 = vmul.f32 %v1349_v34, %v2586_v11 }
 0x57f   :  { %v1623_v62 = vadd.f32 %v1622_v3, %v1466_v10  ;;  %v1639_v58 = vadd.f32 %v1638_v38, %v1477_v39 }
 0x581   :  { %v1640_v0 = vadd.f32 %v1639_v58, %v1478_v60  ;;  %v1717_v58 = vld [vmem:[#allocation7 + $0x38] sm:$0xff]  ;;  %v1718_v60 = vld [vmem:[#allocation7 + $0x40] sm:$0xff] }
 0x583   :  { %v1641_v5 = vadd.f32 %v1640_v0, %v1479_v63 }
 0x584   :  { %v1029_v56 = vpop.permute.xlu2 %1028 }
 0x585   :  { %v1452_v2 = vmul.f32 %v1324_v59, %v1029_v56 }
 0x587   :  { %v1604_v32 = vadd.f32 %v1603_v48, %v1452_v2  ;;  %v1353_v2 = vld [vmem:[#allocation6 + $0x3d8] sm:$0xff]  ;;  %v1355_v48 = vld [vmem:[#allocation6 + $0x3e8] sm:$0xff] }
 0x588   :  { %v1481_v9 = vmul.f32 %v1353_v2, %v2592_v19 }
 0x58c   :  { %v1120_v8 = vpop.permute.xlu1 %1119 }
 0x58d   :  { %v1467_v16 = vmul.f32 %v1339_v7, %v1120_v8  ;;  %v1354_v8 = vld [vmem:[#allocation6 + $0x3e0] sm:$0xff] }
 0x58e   :  { %v1482_v12 = vmul.f32 %v1354_v8, %v2594_v40 }
 0x58f   :  { %v1624_v23 = vadd.f32 %v1623_v62, %v1467_v16 }
 0x591   :  { %v1625_v37 = vadd.f32 %v1624_v23, %v1468_v42 }
 0x594   :  { %v1035_v6 = vpop.permute.xlu2 %1034  ;;  %v1217_v50 = vpop.permute.xlu1 %1216 }
 0x595   :  { %v1453_v28 = vmul.f32 %v1325_v52, %v1035_v6  ;;  %v1480_v52 = vmul.f32 %v1352_v1, %v2596_v30  ;;  %v1720_v1 = vld [vmem:[#allocation7 + $0x50] sm:$0xff] }
 0x597   :  { %v1605_v18 = vadd.f32 %v1604_v32, %v1453_v28  ;;  %v1642_v49 = vadd.f32 %v1641_v5, %v1480_v52  ;;  %v1483_v32 = vmul.f32 %v1355_v48, %v1217_v50  ;;  %v1721_v5 = vld [vmem:[#allocation7 + $0x58] sm:$0xff]  ;;  %v1722_v52 = vld [vmem:[#allocation7 + $0x60] sm:$0xff] }
 0x599   :  { %v1606_v13 = vrot.slane %v1605_v18, 4  ;;  %v1643_v3 = vadd.f32 %v1642_v49, %v1481_v9  ;;  %v1724_v49 = vld [vmem:[#allocation7 + $0x70] sm:$0xff] }
 0x59b   :  { %v1607_v54 = vadd.f32 %v1606_v13, %v1605_v18  ;;  %v1644_v16 = vadd.f32 %v1643_v3, %v1482_v12 }
 0x59c   :  { %v1132_v46 = vpop.permute.xlu2 %1131 }
 0x59d   :  { %v1608_v61 = vrot.slane %v1607_v54, 2  ;;  %v1469_v36 = vmul.f32 %v1341_v24, %v1132_v46  ;;  %v1645_v62 = vadd.f32 %v1644_v16, %v1483_v32  ;;  %v1943_v24 = vld [vmem:[%s2630_s8] ss:$0 sm:$0xff]  ;;  %v1711_v46 = vld [vmem:[#allocation7 + $0x8] sm:$0xff]  ;;  %s2098_s8 = smov [#allocation12]  }
 0x59e   :  { %s1786_s4 = sshll.u32 %s2098_s8, 4  ;;  %s1787_s4 = int_to_ptr.vmem [resolvable:$true] %s1786_s4 }
 0x59f   :  { %v1609_v55 = vadd.f32 %v1608_v61, %v1607_v54  ;;  %v1626_v53 = vadd.f32 %v1625_v37, %v1469_v36  ;;  %v1710_v54 = vld [vmem:[#allocation7] sm:$0xff]  ;;  %v1713_v61 = vld [vmem:[#allocation7 + $0x18] sm:$0xff] }
 0x5a1   :  { %v1610_v56 = vrot.slane %v1609_v55, 1  ;;  %v1627_v57 = vrot.slane %v1626_v53, 4 }
 0x5a3   :  { %v1611_v4 = vadd.f32 %v1610_v56, %v1609_v55  ;;  %v1628_v59 = vadd.f32 %v1627_v57, %v1626_v53  ;;  %v1715_v53 = vld [vmem:[#allocation7 + $0x28] sm:$0xff]  ;;  %v1716_v57 = vld [vmem:[#allocation7 + $0x30] sm:$0xff] }
 0x5a4   :  { %v1223_v25 = vpop.permute.xlu1 %1222 }
 0x5a5   :  { %v1629_v11 = vrot.slane %v1628_v59, 2  ;;  %v1686_v26 = vsel %vm382_vm5, %v1611_v4, %v2530_v45  ;;  %v1356_v45 = vld [vmem:[#allocation6 + $0x3f0] sm:$0xff] }
 0x5a6   :  { %v1484_v28 = vmul.f32 %v1356_v45, %v1223_v25 }
 0x5a7   :  { %v1630_v47 = vadd.f32 %v1629_v11, %v1628_v59  ;;  %v1719_v11 = vld [vmem:[#allocation7 + $0x48] sm:$0xff] }
 0x5a8   :  { %v1646_v41 = vadd.f32 %v1645_v62, %v1484_v28 }
 0x5a9   :  { %v1631_v7 = vrot.slane %v1630_v47, 1 }
 0x5ab   :  { %v1632_v10 = vadd.f32 %v1631_v7, %v1630_v47 }
 0x5ad   :  { %v1687_v6 = vsel %vm384_vm6, %v1632_v10, %v1686_v26  ;;  %v1723_v10 = vld [vmem:[#allocation7 + $0x68] sm:$0xff] }
 0x5b4   :  { %v1229_v18 = vpop.permute.xlu1 %1228 }
 0x5b5   :  { %v1485_v30 = vmul.f32 %v1357_v17, %v1229_v18 }
 0x5b7   :  { %v1647_v20 = vadd.f32 %v1646_v41, %v1485_v30 }
 0x5b9   :  { %v1648_v19 = vrot.slane %v1647_v20, 4 }
 0x5bb   :  { %v1649_v21 = vadd.f32 %v1648_v19, %v1647_v20 }
 0x5bd   :  { %v1650_v22 = vrot.slane %v1649_v21, 2 }
 0x5bf   :  { %v1651_v23 = vadd.f32 %v1650_v22, %v1649_v21 }
 0x5c1   :  { %v1652_v13 = vrot.slane %v1651_v23, 1 }
 0x5c3   :  { %v1653_v27 = vadd.f32 %v1652_v13, %v1651_v23 }
 0x5c5   :  { %v1688_v40 = vsel %vm386_vm7, %v1653_v27, %v1687_v6  ;;  %v1725_v6 = vld [vmem:[#allocation7 + $0x78] sm:$0xff] }
 0x5c6   :  { %1706 = vmatmul.f32.vlgmr.msra.gmra.mxu1 %v1688_v40 }
 0x643   :  { %v1707_v42 = vpop.f32.mrf.mxu1 }
 0x644   :  { %v1708_v29 = vadd.f32 %v1943_v24, %v1707_v42 }
 0x646   :  { %v1727_v31 = vrot.slane %v1708_v29, 1  ;;  %v1728_v33 = vrot.slane %v1708_v29, 2  ;;  %v1729_v34 = vrot.slane %v1708_v29, 3  ;;  %v1730_v36 = vrot.slane %v1708_v29, 4 }
 0x647   :  { %v1734_v37 = vperm.slane %v1708_v29, 0  ;;  %v1731_v15 = vrot.slane %v1708_v29, 5  ;;  %v1732_v4 = vrot.slane %v1708_v29, 6  ;;  %v1733_v26 = vrot.slane %v1708_v29, 7 }
 0x648   :  { %v1735_v39 = vperm.slane %v1727_v31, 0  ;;  %v1736_v55 = vperm.slane %v1728_v33, 0  ;;  %v1737_v38 = vperm.slane %v1729_v34, 0  ;;  %v1738_v59 = vperm.slane %v1730_v36, 0 }
 0x649   :  { %v1750_v56 = vmul.f32 %v1734_v37, %v1710_v54  ;;  %v1751_v43 = vmul.f32 %v1734_v37, %v1711_v46  ;;  %v1739_v0 = vperm.slane %v1731_v15, 0  ;;  %v1740_v7 = vperm.slane %v1732_v4, 0 }
 0x64a   :  { %v1752_v14 = vmul.f32 %v1735_v39, %v1712_v35  ;;  %v1753_v44 = vmul.f32 %v1735_v39, %v1713_v61  ;;  %v1754_v50 = vmul.f32 %v1736_v55, %v1714_v51  ;;  %v1755_v63 = vmul.f32 %v1736_v55, %v1715_v53 }
 0x64b   :  { %1766 = vst [vmem:[#allocation12] sm:$0xff] %v1750_v56  ;;  %v1756_v47 = vmul.f32 %v1737_v38, %v1716_v57  ;;  %v1757_v2 = vmul.f32 %v1737_v38, %v1717_v58  ;;  %v1758_v8 = vmul.f32 %v1738_v59, %v1718_v60  ;;  %v1759_v9 = vmul.f32 %v1738_v59, %v1719_v11 }
 0x64c   :  { %1767 = vst [vmem:[#allocation12 + $0x8] sm:$0xff] %v1751_v43  ;;  %v1741_v48 = vperm.slane %v1733_v26, 0  ;;  %v1760_v25 = vmul.f32 %v1739_v0, %v1720_v1  ;;  %v1761_v12 = vmul.f32 %v1739_v0, %v1721_v5  ;;  %v1762_v45 = vmul.f32 %v1740_v7, %v1722_v52 }
 0x64d   :  { %1768 = vst [vmem:[#allocation12 + $0x10] sm:$0xff] %v1752_v14  ;;  %v1763_v3 = vmul.f32 %v1740_v7, %v1723_v10 }
 0x64e   :  { %1769 = vst [vmem:[#allocation12 + $0x18] sm:$0xff] %v1753_v44  ;;  %v1764_v32 = vmul.f32 %v1741_v48, %v1724_v49  ;;  %v1765_v16 = vmul.f32 %v1741_v48, %v1725_v6 }
 0x64f   :  { %1770 = vst [vmem:[#allocation12 + $0x20] sm:$0xff] %v1754_v50 }
 0x650   :  { %1771 = vst [vmem:[#allocation12 + $0x28] sm:$0xff] %v1755_v63 }
 0x651   :  { %1772 = vst [vmem:[#allocation12 + $0x30] sm:$0xff] %v1756_v47 }
 0x652   :  { %1773 = vst [vmem:[#allocation12 + $0x38] sm:$0xff] %v1757_v2 }
 0x653   :  { %1774 = vst [vmem:[#allocation12 + $0x40] sm:$0xff] %v1758_v8 }
 0x654   :  { %1775 = vst [vmem:[#allocation12 + $0x48] sm:$0xff] %v1759_v9 }
 0x655   :  { %1776 = vst [vmem:[#allocation12 + $0x50] sm:$0xff] %v1760_v25 }
 0x656   :  { %1777 = vst [vmem:[#allocation12 + $0x58] sm:$0xff] %v1761_v12 }
 0x657   :  { %1778 = vst [vmem:[#allocation12 + $0x60] sm:$0xff] %v1762_v45 }
 0x658   :  { %1779 = vst [vmem:[#allocation12 + $0x68] sm:$0xff] %v1763_v3 }
 0x659   :  { %1780 = vst [vmem:[#allocation12 + $0x70] sm:$0xff] %v1764_v32 }
 0x65a   :  { %1781 = vst [vmem:[#allocation12 + $0x78] sm:$0xff] %v1765_v16 }
 0x65b   :  { %1794 = dma.vmem_to_hbm [thread:$0]  %s1787_s4, 2048, %s1789_s24, [#allocation4], %s2091_s17, %s2091_s17, %s2092_s18  }
 0x65c   :  { %2088 = dma.done.wait [#allocation4], 2048  }
 0x65d   :  { %2089 = vsyncadd [#allocation4], 4294965248 }
 0x65e   :  { %1799 = vsyncpa [#allocation3], 1 }
 0x65f   :  { %1800 = vsyncpa [#allocation8], 1 }
 0x660   :  { %1801 = vsyncpa [#allocation11], 1 }
 0x661   :  { %1802 = vsyncpa [#allocation4], 1 }
 0x662   :  { %1803 = vsyncpa [#allocation5], 1 }

</bundles_post_ra>
